<compile_context>
chip_gen: v7x
topology: tpu7x:2x2x1
jax: 0.10.0
libtpu: 0.0.40
codegen_flags: <defaults>
</compile_context>

<pallas_src>
import functools

import jax
import jax.numpy as jnp
import numpy as np
from jax.experimental import pallas as pl
from jax.experimental.pallas import tpu as pltpu

KS = 7
PAD = (KS - 1) // 2
BN_EPS = 1e-5


# ----------------------------- kernel body ---------------------------------
def _attention_gate(zmax, zmean, t_ref, bias):
    """sigmoid(BN-folded 7x7 'same' conv([zmax; zmean])) via MXU banded matmuls.

    zmax, zmean : (P, Q) f32 ZPool maps.
    t_ref       : (7, 2Q, Q) VMEM ref; t_ref[kh] is the banded (Toeplitz)
                  matrix for kernel row kh with both input channels stacked
                  along the contraction dim (rows 0:Q = max ch, Q:2Q = mean).
    bias        : scalar BN-folded conv bias.
    """
    P, Q = zmax.shape
    zc = jnp.concatenate([zmax, zmean], axis=1)               # (P, 2Q)
    zrow = jnp.zeros((PAD, 2 * Q), jnp.float32)
    zp = jnp.concatenate([zrow, zc, zrow], axis=0)            # (P + 6, 2Q)
    acc = jnp.zeros((P, Q), jnp.float32) + bias
    for kh in range(KS):                                      # 7 MXU dots
        acc = acc + jnp.dot(zp[kh:kh + P, :], t_ref[kh],
                            preferred_element_type=jnp.float32)
    return jax.nn.sigmoid(acc)


def _triplet_attention_kernel(x_ref, t_hw_ref, t_cw_ref, t_hc_ref,
                              e_cw_ref, e_hc_ref, b_ref, o_ref, *, C, H, W):
    x = x_ref[...].astype(jnp.float32)                        # (C, H*W) lane-dense

    # Fused ZPool reductions: one traversal of the tile in H chunks of W lanes
    # produces max & sum for all three orientations at once.
    hw_max_rows, hw_sum_rows = [], []
    hc_max_cols, hc_sum_cols = [], []
    cw_max = None
    cw_sum = None
    for h in range(H):
        chunk = x[:, h * W:(h + 1) * W]                       # (C, W)
        hw_max_rows.append(jnp.max(chunk, axis=0, keepdims=True))   # over C
        hw_sum_rows.append(jnp.sum(chunk, axis=0, keepdims=True))
        hc_max_cols.append(jnp.max(chunk, axis=1, keepdims=True))   # over W
        hc_sum_cols.append(jnp.sum(chunk, axis=1, keepdims=True))
        cw_max = chunk if h == 0 else jnp.maximum(cw_max, chunk)    # over H
        cw_sum = chunk if h == 0 else cw_sum + chunk

    zmax_hw = jnp.concatenate(hw_max_rows, axis=0)            # (H, W) ZPool over C
    zmean_hw = jnp.concatenate(hw_sum_rows, axis=0) * (1.0 / C)
    zmax_cw = cw_max                                          # (C, W) ZPool over H
    zmean_cw = cw_sum * (1.0 / H)
    zmax_hc = jnp.concatenate(hc_max_cols, axis=1)            # (C, H) ZPool over W
    zmean_hc = jnp.concatenate(hc_sum_cols, axis=1) * (1.0 / W)

    s_hw = _attention_gate(zmax_hw, zmean_hw, t_hw_ref, b_ref[0])   # (H, W)
    s_cw = _attention_gate(zmax_cw, zmean_cw, t_cw_ref, b_ref[1])   # (C, W)
    s_hc = _attention_gate(zmax_hc, zmean_hc, t_hc_ref, b_ref[2])   # (C, H)

    # Combine in the lane-dense (C, H*W) layout.  s_cw / s_hc are expanded to
    # the flat layout with MXU matmuls against 0/1 matrices (no XLU lane
    # broadcast); s_hw is flattened by lane-concatenation of its rows and
    # broadcast over the leading C dim (cheap).
    s_hw_flat = jnp.concatenate([s_hw[h:h + 1, :] for h in range(H)], axis=1)
    s_cw_flat = jnp.dot(s_cw, e_cw_ref[...], preferred_element_type=jnp.float32)
    s_hc_flat = jnp.dot(s_hc, e_hc_ref[...], preferred_element_type=jnp.float32)
    total = (s_hw_flat + s_cw_flat + s_hc_flat) * (1.0 / 3.0)

    o_ref[...] = (x * total).astype(o_ref.dtype)


# --------------------------- host-side helpers ------------------------------
def _fold_bn(w, gamma, beta, rmean, rvar, eps=BN_EPS):
    # BatchNorm (inference / running stats) folded into the conv.
    w = np.asarray(w, np.float32)
    gamma = np.asarray(gamma, np.float32)
    beta = np.asarray(beta, np.float32)
    rmean = np.asarray(rmean, np.float32)
    rvar = np.asarray(rvar, np.float32)
    s = gamma / np.sqrt(rvar + eps)                           # (1,)
    k = (w * s[:, None, None, None]).reshape(2, KS, KS)
    b = float(beta[0] - rmean[0] * s[0])
    return k, b


def _banded_gate_weights(gate_params, q, transpose_spatial):
    """Build (7, 2q, q) banded matrices so the 7x7 'same' conv of the 2-channel
    ZPool map becomes  sum_kh  zpad[kh:kh+P, :] @ T[kh]  on the MXU."""
    k, b = _fold_bn(gate_params["w"], *gate_params["bn"])
    if transpose_spatial:                 # hc gate: map is stored as (C, H)
        k = np.transpose(k, (0, 2, 1))
    t = np.zeros((KS, 2 * q, q), np.float32)
    for ci in range(2):
        for kh in range(KS):
            for kw in range(KS):
                t[kh, ci * q:(ci + 1) * q, :] += (
                    k[ci, kh, kw] * np.eye(q, k=PAD - kw, dtype=np.float32))
    return jnp.asarray(t), b


def triplet_attention(x, params):
    B, C, H, W = x.shape
    HW = H * W

    t_hw, b_hw = _banded_gate_weights(params["hw"], W, transpose_spatial=False)
    t_cw, b_cw = _banded_gate_weights(params["cw"], W, transpose_spatial=False)
    t_hc, b_hc = _banded_gate_weights(params["hc"], H, transpose_spatial=True)
    bias = jnp.asarray([b_hw, b_cw, b_hc], jnp.float32)

    # 0/1 expansion matrices:
    #   (s_cw @ e_cw)[c, h*W + w] = s_cw[c, w]
    #   (s_hc @ e_hc)[c, h*W + w] = s_hc[c, h]
    e_cw = jnp.asarray(np.tile(np.eye(W, dtype=np.float32), (1, H)))    # (W, HW)
    e_hc = jnp.asarray(np.repeat(np.eye(H, dtype=np.float32), W, axis=1))  # (H, HW)

    x_flat = x.reshape(B, C, HW)          # lane-dense I/O layout (free in HBM)

    kernel = functools.partial(_triplet_attention_kernel, C=C, H=H, W=W)
    out_flat = pl.pallas_call(
        kernel,
        out_shape=jax.ShapeDtypeStruct((B, C, HW), x.dtype),
        grid=(B,),
        in_specs=[
            pl.BlockSpec((None, C, HW), lambda b: (b, 0, 0)),
            pl.BlockSpec((KS, 2 * W, W), lambda b: (0, 0, 0)),
            pl.BlockSpec((KS, 2 * W, W), lambda b: (0, 0, 0)),
            pl.BlockSpec((KS, 2 * H, H), lambda b: (0, 0, 0)),
            pl.BlockSpec((W, HW), lambda b: (0, 0)),
            pl.BlockSpec((H, HW), lambda b: (0, 0)),
            pl.BlockSpec(memory_space=pltpu.MemorySpace.SMEM),
        ],
        out_specs=pl.BlockSpec((None, C, HW), lambda b: (b, 0, 0)),
        compiler_params=pltpu.CompilerParams(
            dimension_semantics=("parallel",),
            vmem_limit_bytes=48 * 1024 * 1024),
    )(x_flat, t_hw, t_cw, t_hc, e_cw, e_hc, bias)
    return out_flat.reshape(B, C, H, W)


# ------------------------- pure-JAX reference -------------------------------
def _gate_ref(xp, w, gamma, beta, rmean, rvar):
    zmax = jnp.max(xp, axis=1, keepdims=True)
    zmean = jnp.mean(xp, axis=1, keepdims=True)
    z = jnp.concatenate([zmax, zmean], axis=1)
    y = jax.lax.conv_general_dilated(
        z, w, window_strides=(1, 1), padding=[(PAD, PAD), (PAD, PAD)],
        dimension_numbers=("NCHW", "OIHW", "NCHW"),
        precision=jax.lax.Precision.HIGHEST)
    y = (y - rmean) * (gamma / jnp.sqrt(rvar + BN_EPS)) + beta
    return xp * jax.nn.sigmoid(y)


def triplet_attention_ref(x, params):
    xp1 = jnp.transpose(x, (0, 2, 1, 3))
    o11 = jnp.transpose(_gate_ref(xp1, params["cw"]["w"], *params["cw"]["bn"]),
                        (0, 2, 1, 3))
    xp2 = jnp.transpose(x, (0, 3, 2, 1))
    o21 = jnp.transpose(_gate_ref(xp2, params["hc"]["w"], *params["hc"]["bn"]),
                        (0, 3, 2, 1))
    ohw = _gate_ref(x, params["hw"]["w"], *params["hw"]["bn"])
    return (1.0 / 3.0) * (ohw + o11 + o21)


def init_params(key):
    ks = jax.random.split(key, 3)

    def gate(k):
        w = jax.random.normal(k, (1, 2, KS, KS), jnp.float32) * 0.1
        gamma = jnp.ones((1,), jnp.float32)      # BatchNorm2d(1) defaults
        beta = jnp.zeros((1,), jnp.float32)
        rmean = jnp.zeros((1,), jnp.float32)
        rvar = jnp.ones((1,), jnp.float32)
        return {"w": w, "bn": (gamma, beta, rmean, rvar)}

    return {"cw": gate(ks[0]), "hc": gate(ks[1]), "hw": gate(ks[2])}


if __name__ == "__main__":
    key = jax.random.PRNGKey(0)
    kx, kp = jax.random.split(key)
    x = jax.random.normal(kx, (2, 8, 16, 16), jnp.float32)
    params = init_params(kp)

    out = jax.block_until_ready(triplet_attention(x, params))
    ref = triplet_attention_ref(x, params)

    assert out.shape == x.shape and out.dtype == x.dtype
    # Tolerance leaves headroom for possible bf16-pass MXU rounding in the
    # f32 banded-matmul conv; a real indexing/orientation bug would be O(0.1+).
    np.testing.assert_allclose(np.asarray(out), np.asarray(ref),
                               rtol=5e-3, atol=5e-3)
    print("KERNEL_OK")
</pallas_src>

<mosaic_0001>
module attributes {stable_mosaic.version = 11 : i64} {
  func.func @_triplet_attention_kernel(%arg0: i32, %arg1: memref<1x8x256xf32, #tpu.memory_space<vmem>>, %arg2: memref<7x32x16xf32, #tpu.memory_space<vmem>>, %arg3: memref<7x32x16xf32, #tpu.memory_space<vmem>>, %arg4: memref<7x32x16xf32, #tpu.memory_space<vmem>>, %arg5: memref<16x256xf32, #tpu.memory_space<vmem>>, %arg6: memref<16x256xf32, #tpu.memory_space<vmem>>, %arg7: memref<3xf32, #tpu.memory_space<smem>>, %arg8: memref<1x8x256xf32, #tpu.memory_space<vmem>>) attributes {dimension_semantics = [#tpu.dimension_semantics<parallel>], iteration_bounds = array<i64: 2>, scalar_prefetch = 0 : i64, scratch_operands = 0 : i64, tpu.core_type = #tpu.core_type<tc>, window_params = [{transform_indices = @transform_0, window_bounds = array<i64: 1, 8, 256>}, {pipeline_mode = #tpu.pipeline_mode<synchronous>, transform_indices = @transform_1, window_bounds = array<i64: 7, 32, 16>}, {pipeline_mode = #tpu.pipeline_mode<synchronous>, transform_indices = @transform_2, window_bounds = array<i64: 7, 32, 16>}, {pipeline_mode = #tpu.pipeline_mode<synchronous>, transform_indices = @transform_3, window_bounds = array<i64: 7, 32, 16>}, {pipeline_mode = #tpu.pipeline_mode<synchronous>, transform_indices = @transform_4, window_bounds = array<i64: 16, 256>}, {pipeline_mode = #tpu.pipeline_mode<synchronous>, transform_indices = @transform_5, window_bounds = array<i64: 16, 256>}, {transform_indices = @transform_6, window_bounds = array<i64: 3>}, {transform_indices = @transform_7, window_bounds = array<i64: 1, 8, 256>}]} {
    %c0 = arith.constant 0 : index
    %c0_0 = arith.constant 0 : index
    %c0_1 = arith.constant 0 : index
    %0 = vector.load %arg1[%c0, %c0_0, %c0_1] : memref<1x8x256xf32, #tpu.memory_space<vmem>>, vector<1x8x256xf32>
    %1 = vector.shape_cast %0 : vector<1x8x256xf32> to vector<8x256xf32>
    %2 = vector.extract_strided_slice %1 {offsets = [0, 0], sizes = [8, 16], strides = [1, 1]} : vector<8x256xf32> to vector<8x16xf32>
    %cst = arith.constant dense<0xFF800000> : vector<16xf32>
    %3 = vector.multi_reduction <maximumf>, %2, %cst [0] : vector<8x16xf32> to vector<16xf32>
    %4 = vector.shape_cast %3 : vector<16xf32> to vector<1x16xf32>
    %cst_2 = arith.constant dense<0.000000e+00> : vector<16xf32>
    %5 = vector.multi_reduction <add>, %2, %cst_2 [0] : vector<8x16xf32> to vector<16xf32>
    %6 = vector.shape_cast %5 : vector<16xf32> to vector<1x16xf32>
    %cst_3 = arith.constant dense<0xFF800000> : vector<8xf32>
    %7 = vector.multi_reduction <maximumf>, %2, %cst_3 [1] : vector<8x16xf32> to vector<8xf32>
    %8 = vector.shape_cast %7 : vector<8xf32> to vector<8x1xf32>
    %cst_4 = arith.constant dense<0.000000e+00> : vector<8xf32>
    %9 = vector.multi_reduction <add>, %2, %cst_4 [1] : vector<8x16xf32> to vector<8xf32>
    %10 = vector.shape_cast %9 : vector<8xf32> to vector<8x1xf32>
    %11 = vector.extract_strided_slice %1 {offsets = [0, 16], sizes = [8, 16], strides = [1, 1]} : vector<8x256xf32> to vector<8x16xf32>
    %cst_5 = arith.constant dense<0xFF800000> : vector<16xf32>
    %12 = vector.multi_reduction <maximumf>, %11, %cst_5 [0] : vector<8x16xf32> to vector<16xf32>
    %13 = vector.shape_cast %12 : vector<16xf32> to vector<1x16xf32>
    %cst_6 = arith.constant dense<0.000000e+00> : vector<16xf32>
    %14 = vector.multi_reduction <add>, %11, %cst_6 [0] : vector<8x16xf32> to vector<16xf32>
    %15 = vector.shape_cast %14 : vector<16xf32> to vector<1x16xf32>
    %cst_7 = arith.constant dense<0xFF800000> : vector<8xf32>
    %16 = vector.multi_reduction <maximumf>, %11, %cst_7 [1] : vector<8x16xf32> to vector<8xf32>
    %17 = vector.shape_cast %16 : vector<8xf32> to vector<8x1xf32>
    %cst_8 = arith.constant dense<0.000000e+00> : vector<8xf32>
    %18 = vector.multi_reduction <add>, %11, %cst_8 [1] : vector<8x16xf32> to vector<8xf32>
    %19 = vector.shape_cast %18 : vector<8xf32> to vector<8x1xf32>
    %20 = arith.maximumf %2, %11 : vector<8x16xf32>
    %21 = arith.addf %2, %11 : vector<8x16xf32>
    %22 = vector.extract_strided_slice %1 {offsets = [0, 32], sizes = [8, 16], strides = [1, 1]} : vector<8x256xf32> to vector<8x16xf32>
    %cst_9 = arith.constant dense<0xFF800000> : vector<16xf32>
    %23 = vector.multi_reduction <maximumf>, %22, %cst_9 [0] : vector<8x16xf32> to vector<16xf32>
    %24 = vector.shape_cast %23 : vector<16xf32> to vector<1x16xf32>
    %cst_10 = arith.constant dense<0.000000e+00> : vector<16xf32>
    %25 = vector.multi_reduction <add>, %22, %cst_10 [0] : vector<8x16xf32> to vector<16xf32>
    %26 = vector.shape_cast %25 : vector<16xf32> to vector<1x16xf32>
    %cst_11 = arith.constant dense<0xFF800000> : vector<8xf32>
    %27 = vector.multi_reduction <maximumf>, %22, %cst_11 [1] : vector<8x16xf32> to vector<8xf32>
    %28 = vector.shape_cast %27 : vector<8xf32> to vector<8x1xf32>
    %cst_12 = arith.constant dense<0.000000e+00> : vector<8xf32>
    %29 = vector.multi_reduction <add>, %22, %cst_12 [1] : vector<8x16xf32> to vector<8xf32>
    %30 = vector.shape_cast %29 : vector<8xf32> to vector<8x1xf32>
    %31 = arith.maximumf %20, %22 : vector<8x16xf32>
    %32 = arith.addf %21, %22 : vector<8x16xf32>
    %33 = vector.extract_strided_slice %1 {offsets = [0, 48], sizes = [8, 16], strides = [1, 1]} : vector<8x256xf32> to vector<8x16xf32>
    %cst_13 = arith.constant dense<0xFF800000> : vector<16xf32>
    %34 = vector.multi_reduction <maximumf>, %33, %cst_13 [0] : vector<8x16xf32> to vector<16xf32>
    %35 = vector.shape_cast %34 : vector<16xf32> to vector<1x16xf32>
    %cst_14 = arith.constant dense<0.000000e+00> : vector<16xf32>
    %36 = vector.multi_reduction <add>, %33, %cst_14 [0] : vector<8x16xf32> to vector<16xf32>
    %37 = vector.shape_cast %36 : vector<16xf32> to vector<1x16xf32>
    %cst_15 = arith.constant dense<0xFF800000> : vector<8xf32>
    %38 = vector.multi_reduction <maximumf>, %33, %cst_15 [1] : vector<8x16xf32> to vector<8xf32>
    %39 = vector.shape_cast %38 : vector<8xf32> to vector<8x1xf32>
    %cst_16 = arith.constant dense<0.000000e+00> : vector<8xf32>
    %40 = vector.multi_reduction <add>, %33, %cst_16 [1] : vector<8x16xf32> to vector<8xf32>
    %41 = vector.shape_cast %40 : vector<8xf32> to vector<8x1xf32>
    %42 = arith.maximumf %31, %33 : vector<8x16xf32>
    %43 = arith.addf %32, %33 : vector<8x16xf32>
    %44 = vector.extract_strided_slice %1 {offsets = [0, 64], sizes = [8, 16], strides = [1, 1]} : vector<8x256xf32> to vector<8x16xf32>
    %cst_17 = arith.constant dense<0xFF800000> : vector<16xf32>
    %45 = vector.multi_reduction <maximumf>, %44, %cst_17 [0] : vector<8x16xf32> to vector<16xf32>
    %46 = vector.shape_cast %45 : vector<16xf32> to vector<1x16xf32>
    %cst_18 = arith.constant dense<0.000000e+00> : vector<16xf32>
    %47 = vector.multi_reduction <add>, %44, %cst_18 [0] : vector<8x16xf32> to vector<16xf32>
    %48 = vector.shape_cast %47 : vector<16xf32> to vector<1x16xf32>
    %cst_19 = arith.constant dense<0xFF800000> : vector<8xf32>
    %49 = vector.multi_reduction <maximumf>, %44, %cst_19 [1] : vector<8x16xf32> to vector<8xf32>
    %50 = vector.shape_cast %49 : vector<8xf32> to vector<8x1xf32>
    %cst_20 = arith.constant dense<0.000000e+00> : vector<8xf32>
    %51 = vector.multi_reduction <add>, %44, %cst_20 [1] : vector<8x16xf32> to vector<8xf32>
    %52 = vector.shape_cast %51 : vector<8xf32> to vector<8x1xf32>
    %53 = arith.maximumf %42, %44 : vector<8x16xf32>
    %54 = arith.addf %43, %44 : vector<8x16xf32>
    %55 = vector.extract_strided_slice %1 {offsets = [0, 80], sizes = [8, 16], strides = [1, 1]} : vector<8x256xf32> to vector<8x16xf32>
    %cst_21 = arith.constant dense<0xFF800000> : vector<16xf32>
    %56 = vector.multi_reduction <maximumf>, %55, %cst_21 [0] : vector<8x16xf32> to vector<16xf32>
    %57 = vector.shape_cast %56 : vector<16xf32> to vector<1x16xf32>
    %cst_22 = arith.constant dense<0.000000e+00> : vector<16xf32>
    %58 = vector.multi_reduction <add>, %55, %cst_22 [0] : vector<8x16xf32> to vector<16xf32>
    %59 = vector.shape_cast %58 : vector<16xf32> to vector<1x16xf32>
    %cst_23 = arith.constant dense<0xFF800000> : vector<8xf32>
    %60 = vector.multi_reduction <maximumf>, %55, %cst_23 [1] : vector<8x16xf32> to vector<8xf32>
    %61 = vector.shape_cast %60 : vector<8xf32> to vector<8x1xf32>
    %cst_24 = arith.constant dense<0.000000e+00> : vector<8xf32>
    %62 = vector.multi_reduction <add>, %55, %cst_24 [1] : vector<8x16xf32> to vector<8xf32>
    %63 = vector.shape_cast %62 : vector<8xf32> to vector<8x1xf32>
    %64 = arith.maximumf %53, %55 : vector<8x16xf32>
    %65 = arith.addf %54, %55 : vector<8x16xf32>
    %66 = vector.extract_strided_slice %1 {offsets = [0, 96], sizes = [8, 16], strides = [1, 1]} : vector<8x256xf32> to vector<8x16xf32>
    %cst_25 = arith.constant dense<0xFF800000> : vector<16xf32>
    %67 = vector.multi_reduction <maximumf>, %66, %cst_25 [0] : vector<8x16xf32> to vector<16xf32>
    %68 = vector.shape_cast %67 : vector<16xf32> to vector<1x16xf32>
    %cst_26 = arith.constant dense<0.000000e+00> : vector<16xf32>
    %69 = vector.multi_reduction <add>, %66, %cst_26 [0] : vector<8x16xf32> to vector<16xf32>
    %70 = vector.shape_cast %69 : vector<16xf32> to vector<1x16xf32>
    %cst_27 = arith.constant dense<0xFF800000> : vector<8xf32>
    %71 = vector.multi_reduction <maximumf>, %66, %cst_27 [1] : vector<8x16xf32> to vector<8xf32>
    %72 = vector.shape_cast %71 : vector<8xf32> to vector<8x1xf32>
    %cst_28 = arith.constant dense<0.000000e+00> : vector<8xf32>
    %73 = vector.multi_reduction <add>, %66, %cst_28 [1] : vector<8x16xf32> to vector<8xf32>
    %74 = vector.shape_cast %73 : vector<8xf32> to vector<8x1xf32>
    %75 = arith.maximumf %64, %66 : vector<8x16xf32>
    %76 = arith.addf %65, %66 : vector<8x16xf32>
    %77 = vector.extract_strided_slice %1 {offsets = [0, 112], sizes = [8, 16], strides = [1, 1]} : vector<8x256xf32> to vector<8x16xf32>
    %cst_29 = arith.constant dense<0xFF800000> : vector<16xf32>
    %78 = vector.multi_reduction <maximumf>, %77, %cst_29 [0] : vector<8x16xf32> to vector<16xf32>
    %79 = vector.shape_cast %78 : vector<16xf32> to vector<1x16xf32>
    %cst_30 = arith.constant dense<0.000000e+00> : vector<16xf32>
    %80 = vector.multi_reduction <add>, %77, %cst_30 [0] : vector<8x16xf32> to vector<16xf32>
    %81 = vector.shape_cast %80 : vector<16xf32> to vector<1x16xf32>
    %cst_31 = arith.constant dense<0xFF800000> : vector<8xf32>
    %82 = vector.multi_reduction <maximumf>, %77, %cst_31 [1] : vector<8x16xf32> to vector<8xf32>
    %83 = vector.shape_cast %82 : vector<8xf32> to vector<8x1xf32>
    %cst_32 = arith.constant dense<0.000000e+00> : vector<8xf32>
    %84 = vector.multi_reduction <add>, %77, %cst_32 [1] : vector<8x16xf32> to vector<8xf32>
    %85 = vector.shape_cast %84 : vector<8xf32> to vector<8x1xf32>
    %86 = arith.maximumf %75, %77 : vector<8x16xf32>
    %87 = arith.addf %76, %77 : vector<8x16xf32>
    %88 = vector.extract_strided_slice %1 {offsets = [0, 128], sizes = [8, 16], strides = [1, 1]} : vector<8x256xf32> to vector<8x16xf32>
    %cst_33 = arith.constant dense<0xFF800000> : vector<16xf32>
    %89 = vector.multi_reduction <maximumf>, %88, %cst_33 [0] : vector<8x16xf32> to vector<16xf32>
    %90 = vector.shape_cast %89 : vector<16xf32> to vector<1x16xf32>
    %cst_34 = arith.constant dense<0.000000e+00> : vector<16xf32>
    %91 = vector.multi_reduction <add>, %88, %cst_34 [0] : vector<8x16xf32> to vector<16xf32>
    %92 = vector.shape_cast %91 : vector<16xf32> to vector<1x16xf32>
    %cst_35 = arith.constant dense<0xFF800000> : vector<8xf32>
    %93 = vector.multi_reduction <maximumf>, %88, %cst_35 [1] : vector<8x16xf32> to vector<8xf32>
    %94 = vector.shape_cast %93 : vector<8xf32> to vector<8x1xf32>
    %cst_36 = arith.constant dense<0.000000e+00> : vector<8xf32>
    %95 = vector.multi_reduction <add>, %88, %cst_36 [1] : vector<8x16xf32> to vector<8xf32>
    %96 = vector.shape_cast %95 : vector<8xf32> to vector<8x1xf32>
    %97 = arith.maximumf %86, %88 : vector<8x16xf32>
    %98 = arith.addf %87, %88 : vector<8x16xf32>
    %99 = vector.extract_strided_slice %1 {offsets = [0, 144], sizes = [8, 16], strides = [1, 1]} : vector<8x256xf32> to vector<8x16xf32>
    %cst_37 = arith.constant dense<0xFF800000> : vector<16xf32>
    %100 = vector.multi_reduction <maximumf>, %99, %cst_37 [0] : vector<8x16xf32> to vector<16xf32>
    %101 = vector.shape_cast %100 : vector<16xf32> to vector<1x16xf32>
    %cst_38 = arith.constant dense<0.000000e+00> : vector<16xf32>
    %102 = vector.multi_reduction <add>, %99, %cst_38 [0] : vector<8x16xf32> to vector<16xf32>
    %103 = vector.shape_cast %102 : vector<16xf32> to vector<1x16xf32>
    %cst_39 = arith.constant dense<0xFF800000> : vector<8xf32>
    %104 = vector.multi_reduction <maximumf>, %99, %cst_39 [1] : vector<8x16xf32> to vector<8xf32>
    %105 = vector.shape_cast %104 : vector<8xf32> to vector<8x1xf32>
    %cst_40 = arith.constant dense<0.000000e+00> : vector<8xf32>
    %106 = vector.multi_reduction <add>, %99, %cst_40 [1] : vector<8x16xf32> to vector<8xf32>
    %107 = vector.shape_cast %106 : vector<8xf32> to vector<8x1xf32>
    %108 = arith.maximumf %97, %99 : vector<8x16xf32>
    %109 = arith.addf %98, %99 : vector<8x16xf32>
    %110 = vector.extract_strided_slice %1 {offsets = [0, 160], sizes = [8, 16], strides = [1, 1]} : vector<8x256xf32> to vector<8x16xf32>
    %cst_41 = arith.constant dense<0xFF800000> : vector<16xf32>
    %111 = vector.multi_reduction <maximumf>, %110, %cst_41 [0] : vector<8x16xf32> to vector<16xf32>
    %112 = vector.shape_cast %111 : vector<16xf32> to vector<1x16xf32>
    %cst_42 = arith.constant dense<0.000000e+00> : vector<16xf32>
    %113 = vector.multi_reduction <add>, %110, %cst_42 [0] : vector<8x16xf32> to vector<16xf32>
    %114 = vector.shape_cast %113 : vector<16xf32> to vector<1x16xf32>
    %cst_43 = arith.constant dense<0xFF800000> : vector<8xf32>
    %115 = vector.multi_reduction <maximumf>, %110, %cst_43 [1] : vector<8x16xf32> to vector<8xf32>
    %116 = vector.shape_cast %115 : vector<8xf32> to vector<8x1xf32>
    %cst_44 = arith.constant dense<0.000000e+00> : vector<8xf32>
    %117 = vector.multi_reduction <add>, %110, %cst_44 [1] : vector<8x16xf32> to vector<8xf32>
    %118 = vector.shape_cast %117 : vector<8xf32> to vector<8x1xf32>
    %119 = arith.maximumf %108, %110 : vector<8x16xf32>
    %120 = arith.addf %109, %110 : vector<8x16xf32>
    %121 = vector.extract_strided_slice %1 {offsets = [0, 176], sizes = [8, 16], strides = [1, 1]} : vector<8x256xf32> to vector<8x16xf32>
    %cst_45 = arith.constant dense<0xFF800000> : vector<16xf32>
    %122 = vector.multi_reduction <maximumf>, %121, %cst_45 [0] : vector<8x16xf32> to vector<16xf32>
    %123 = vector.shape_cast %122 : vector<16xf32> to vector<1x16xf32>
    %cst_46 = arith.constant dense<0.000000e+00> : vector<16xf32>
    %124 = vector.multi_reduction <add>, %121, %cst_46 [0] : vector<8x16xf32> to vector<16xf32>
    %125 = vector.shape_cast %124 : vector<16xf32> to vector<1x16xf32>
    %cst_47 = arith.constant dense<0xFF800000> : vector<8xf32>
    %126 = vector.multi_reduction <maximumf>, %121, %cst_47 [1] : vector<8x16xf32> to vector<8xf32>
    %127 = vector.shape_cast %126 : vector<8xf32> to vector<8x1xf32>
    %cst_48 = arith.constant dense<0.000000e+00> : vector<8xf32>
    %128 = vector.multi_reduction <add>, %121, %cst_48 [1] : vector<8x16xf32> to vector<8xf32>
    %129 = vector.shape_cast %128 : vector<8xf32> to vector<8x1xf32>
    %130 = arith.maximumf %119, %121 : vector<8x16xf32>
    %131 = arith.addf %120, %121 : vector<8x16xf32>
    %132 = vector.extract_strided_slice %1 {offsets = [0, 192], sizes = [8, 16], strides = [1, 1]} : vector<8x256xf32> to vector<8x16xf32>
    %cst_49 = arith.constant dense<0xFF800000> : vector<16xf32>
    %133 = vector.multi_reduction <maximumf>, %132, %cst_49 [0] : vector<8x16xf32> to vector<16xf32>
    %134 = vector.shape_cast %133 : vector<16xf32> to vector<1x16xf32>
    %cst_50 = arith.constant dense<0.000000e+00> : vector<16xf32>
    %135 = vector.multi_reduction <add>, %132, %cst_50 [0] : vector<8x16xf32> to vector<16xf32>
    %136 = vector.shape_cast %135 : vector<16xf32> to vector<1x16xf32>
    %cst_51 = arith.constant dense<0xFF800000> : vector<8xf32>
    %137 = vector.multi_reduction <maximumf>, %132, %cst_51 [1] : vector<8x16xf32> to vector<8xf32>
    %138 = vector.shape_cast %137 : vector<8xf32> to vector<8x1xf32>
    %cst_52 = arith.constant dense<0.000000e+00> : vector<8xf32>
    %139 = vector.multi_reduction <add>, %132, %cst_52 [1] : vector<8x16xf32> to vector<8xf32>
    %140 = vector.shape_cast %139 : vector<8xf32> to vector<8x1xf32>
    %141 = arith.maximumf %130, %132 : vector<8x16xf32>
    %142 = arith.addf %131, %132 : vector<8x16xf32>
    %143 = vector.extract_strided_slice %1 {offsets = [0, 208], sizes = [8, 16], strides = [1, 1]} : vector<8x256xf32> to vector<8x16xf32>
    %cst_53 = arith.constant dense<0xFF800000> : vector<16xf32>
    %144 = vector.multi_reduction <maximumf>, %143, %cst_53 [0] : vector<8x16xf32> to vector<16xf32>
    %145 = vector.shape_cast %144 : vector<16xf32> to vector<1x16xf32>
    %cst_54 = arith.constant dense<0.000000e+00> : vector<16xf32>
    %146 = vector.multi_reduction <add>, %143, %cst_54 [0] : vector<8x16xf32> to vector<16xf32>
    %147 = vector.shape_cast %146 : vector<16xf32> to vector<1x16xf32>
    %cst_55 = arith.constant dense<0xFF800000> : vector<8xf32>
    %148 = vector.multi_reduction <maximumf>, %143, %cst_55 [1] : vector<8x16xf32> to vector<8xf32>
    %149 = vector.shape_cast %148 : vector<8xf32> to vector<8x1xf32>
    %cst_56 = arith.constant dense<0.000000e+00> : vector<8xf32>
    %150 = vector.multi_reduction <add>, %143, %cst_56 [1] : vector<8x16xf32> to vector<8xf32>
    %151 = vector.shape_cast %150 : vector<8xf32> to vector<8x1xf32>
    %152 = arith.maximumf %141, %143 : vector<8x16xf32>
    %153 = arith.addf %142, %143 : vector<8x16xf32>
    %154 = vector.extract_strided_slice %1 {offsets = [0, 224], sizes = [8, 16], strides = [1, 1]} : vector<8x256xf32> to vector<8x16xf32>
    %cst_57 = arith.constant dense<0xFF800000> : vector<16xf32>
    %155 = vector.multi_reduction <maximumf>, %154, %cst_57 [0] : vector<8x16xf32> to vector<16xf32>
    %156 = vector.shape_cast %155 : vector<16xf32> to vector<1x16xf32>
    %cst_58 = arith.constant dense<0.000000e+00> : vector<16xf32>
    %157 = vector.multi_reduction <add>, %154, %cst_58 [0] : vector<8x16xf32> to vector<16xf32>
    %158 = vector.shape_cast %157 : vector<16xf32> to vector<1x16xf32>
    %cst_59 = arith.constant dense<0xFF800000> : vector<8xf32>
    %159 = vector.multi_reduction <maximumf>, %154, %cst_59 [1] : vector<8x16xf32> to vector<8xf32>
    %160 = vector.shape_cast %159 : vector<8xf32> to vector<8x1xf32>
    %cst_60 = arith.constant dense<0.000000e+00> : vector<8xf32>
    %161 = vector.multi_reduction <add>, %154, %cst_60 [1] : vector<8x16xf32> to vector<8xf32>
    %162 = vector.shape_cast %161 : vector<8xf32> to vector<8x1xf32>
    %163 = arith.maximumf %152, %154 : vector<8x16xf32>
    %164 = arith.addf %153, %154 : vector<8x16xf32>
    %165 = vector.extract_strided_slice %1 {offsets = [0, 240], sizes = [8, 16], strides = [1, 1]} : vector<8x256xf32> to vector<8x16xf32>
    %cst_61 = arith.constant dense<0xFF800000> : vector<16xf32>
    %166 = vector.multi_reduction <maximumf>, %165, %cst_61 [0] : vector<8x16xf32> to vector<16xf32>
    %167 = vector.shape_cast %166 : vector<16xf32> to vector<1x16xf32>
    %cst_62 = arith.constant dense<0.000000e+00> : vector<16xf32>
    %168 = vector.multi_reduction <add>, %165, %cst_62 [0] : vector<8x16xf32> to vector<16xf32>
    %169 = vector.shape_cast %168 : vector<16xf32> to vector<1x16xf32>
    %cst_63 = arith.constant dense<0xFF800000> : vector<8xf32>
    %170 = vector.multi_reduction <maximumf>, %165, %cst_63 [1] : vector<8x16xf32> to vector<8xf32>
    %171 = vector.shape_cast %170 : vector<8xf32> to vector<8x1xf32>
    %cst_64 = arith.constant dense<0.000000e+00> : vector<8xf32>
    %172 = vector.multi_reduction <add>, %165, %cst_64 [1] : vector<8x16xf32> to vector<8xf32>
    %173 = vector.shape_cast %172 : vector<8xf32> to vector<8x1xf32>
    %174 = arith.maximumf %163, %165 : vector<8x16xf32>
    %175 = arith.addf %164, %165 : vector<8x16xf32>
    %176 = tpu.concatenate %4, %13, %24, %35, %46, %57, %68, %79, %90, %101, %112, %123, %134, %145, %156, %167 in 0 : vector<1x16xf32>, vector<1x16xf32>, vector<1x16xf32>, vector<1x16xf32>, vector<1x16xf32>, vector<1x16xf32>, vector<1x16xf32>, vector<1x16xf32>, vector<1x16xf32>, vector<1x16xf32>, vector<1x16xf32>, vector<1x16xf32>, vector<1x16xf32>, vector<1x16xf32>, vector<1x16xf32>, vector<1x16xf32> -> vector<16x16xf32>
    %177 = tpu.concatenate %6, %15, %26, %37, %48, %59, %70, %81, %92, %103, %114, %125, %136, %147, %158, %169 in 0 : vector<1x16xf32>, vector<1x16xf32>, vector<1x16xf32>, vector<1x16xf32>, vector<1x16xf32>, vector<1x16xf32>, vector<1x16xf32>, vector<1x16xf32>, vector<1x16xf32>, vector<1x16xf32>, vector<1x16xf32>, vector<1x16xf32>, vector<1x16xf32>, vector<1x16xf32>, vector<1x16xf32>, vector<1x16xf32> -> vector<16x16xf32>
    %cst_65 = arith.constant 1.250000e-01 : f32
    %178 = vector.broadcast %cst_65 : f32 to vector<16x16xf32>
    %179 = arith.mulf %177, %178 : vector<16x16xf32>
    %cst_66 = arith.constant 6.250000e-02 : f32
    %180 = vector.broadcast %cst_66 : f32 to vector<8x16xf32>
    %181 = arith.mulf %175, %180 : vector<8x16xf32>
    %182 = tpu.concatenate %8, %17, %28, %39, %50, %61, %72, %83, %94, %105, %116, %127, %138, %149, %160, %171 in 1 : vector<8x1xf32>, vector<8x1xf32>, vector<8x1xf32>, vector<8x1xf32>, vector<8x1xf32>, vector<8x1xf32>, vector<8x1xf32>, vector<8x1xf32>, vector<8x1xf32>, vector<8x1xf32>, vector<8x1xf32>, vector<8x1xf32>, vector<8x1xf32>, vector<8x1xf32>, vector<8x1xf32>, vector<8x1xf32> -> vector<8x16xf32>
    %183 = tpu.concatenate %10, %19, %30, %41, %52, %63, %74, %85, %96, %107, %118, %129, %140, %151, %162, %173 in 1 : vector<8x1xf32>, vector<8x1xf32>, vector<8x1xf32>, vector<8x1xf32>, vector<8x1xf32>, vector<8x1xf32>, vector<8x1xf32>, vector<8x1xf32>, vector<8x1xf32>, vector<8x1xf32>, vector<8x1xf32>, vector<8x1xf32>, vector<8x1xf32>, vector<8x1xf32>, vector<8x1xf32>, vector<8x1xf32> -> vector<8x16xf32>
    %cst_67 = arith.constant 6.250000e-02 : f32
    %184 = vector.broadcast %cst_67 : f32 to vector<8x16xf32>
    %185 = arith.mulf %183, %184 : vector<8x16xf32>
    %c0_68 = arith.constant 0 : index
    %186 = memref.load %arg7[%c0_68] : memref<3xf32, #tpu.memory_space<smem>>
    %187 = tpu.concatenate %176, %179 in 1 : vector<16x16xf32>, vector<16x16xf32> -> vector<16x32xf32>
    %cst_69 = arith.constant 0.000000e+00 : f32
    %188 = vector.broadcast %cst_69 : f32 to vector<3x32xf32>
    %189 = tpu.concatenate %188, %187, %188 in 0 : vector<3x32xf32>, vector<16x32xf32>, vector<3x32xf32> -> vector<22x32xf32>
    %cst_70 = arith.constant 0.000000e+00 : f32
    %190 = vector.broadcast %cst_70 : f32 to vector<16x16xf32>
    %191 = vector.broadcast %186 : f32 to vector<16x16xf32>
    %192 = arith.addf %190, %191 : vector<16x16xf32>
    %193 = vector.extract_strided_slice %189 {offsets = [0, 0], sizes = [16, 32], strides = [1, 1]} : vector<22x32xf32> to vector<16x32xf32>
    %c0_71 = arith.constant 0 : index
    %c0_72 = arith.constant 0 : index
    %c0_73 = arith.constant 0 : index
    %194 = vector.load %arg2[%c0_71, %c0_72, %c0_73] : memref<7x32x16xf32, #tpu.memory_space<vmem>>, vector<1x32x16xf32>
    %195 = vector.shape_cast %194 : vector<1x32x16xf32> to vector<32x16xf32>
    %cst_74 = arith.constant dense<0.000000e+00> : vector<16x16xf32>
    %196 = tpu.matmul %193, %195, %cst_74 {dimension_numbers = #tpu.dot_dimension_numbers<[1], [0], [0], [1], [0, 0, 1, 1], [], []>} : vector<16x32xf32>, vector<32x16xf32>, vector<16x16xf32> -> vector<16x16xf32>
    %197 = arith.addf %192, %196 : vector<16x16xf32>
    %198 = vector.extract_strided_slice %189 {offsets = [1, 0], sizes = [16, 32], strides = [1, 1]} : vector<22x32xf32> to vector<16x32xf32>
    %c1 = arith.constant 1 : index
    %c0_75 = arith.constant 0 : index
    %c0_76 = arith.constant 0 : index
    %199 = vector.load %arg2[%c1, %c0_75, %c0_76] : memref<7x32x16xf32, #tpu.memory_space<vmem>>, vector<1x32x16xf32>
    %200 = vector.shape_cast %199 : vector<1x32x16xf32> to vector<32x16xf32>
    %cst_77 = arith.constant dense<0.000000e+00> : vector<16x16xf32>
    %201 = tpu.matmul %198, %200, %cst_77 {dimension_numbers = #tpu.dot_dimension_numbers<[1], [0], [0], [1], [0, 0, 1, 1], [], []>} : vector<16x32xf32>, vector<32x16xf32>, vector<16x16xf32> -> vector<16x16xf32>
    %202 = arith.addf %197, %201 : vector<16x16xf32>
    %203 = vector.extract_strided_slice %189 {offsets = [2, 0], sizes = [16, 32], strides = [1, 1]} : vector<22x32xf32> to vector<16x32xf32>
    %c2 = arith.constant 2 : index
    %c0_78 = arith.constant 0 : index
    %c0_79 = arith.constant 0 : index
    %204 = vector.load %arg2[%c2, %c0_78, %c0_79] : memref<7x32x16xf32, #tpu.memory_space<vmem>>, vector<1x32x16xf32>
    %205 = vector.shape_cast %204 : vector<1x32x16xf32> to vector<32x16xf32>
    %cst_80 = arith.constant dense<0.000000e+00> : vector<16x16xf32>
    %206 = tpu.matmul %203, %205, %cst_80 {dimension_numbers = #tpu.dot_dimension_numbers<[1], [0], [0], [1], [0, 0, 1, 1], [], []>} : vector<16x32xf32>, vector<32x16xf32>, vector<16x16xf32> -> vector<16x16xf32>
    %207 = arith.addf %202, %206 : vector<16x16xf32>
    %208 = vector.extract_strided_slice %189 {offsets = [3, 0], sizes = [16, 32], strides = [1, 1]} : vector<22x32xf32> to vector<16x32xf32>
    %c3 = arith.constant 3 : index
    %c0_81 = arith.constant 0 : index
    %c0_82 = arith.constant 0 : index
    %209 = vector.load %arg2[%c3, %c0_81, %c0_82] : memref<7x32x16xf32, #tpu.memory_space<vmem>>, vector<1x32x16xf32>
    %210 = vector.shape_cast %209 : vector<1x32x16xf32> to vector<32x16xf32>
    %cst_83 = arith.constant dense<0.000000e+00> : vector<16x16xf32>
    %211 = tpu.matmul %208, %210, %cst_83 {dimension_numbers = #tpu.dot_dimension_numbers<[1], [0], [0], [1], [0, 0, 1, 1], [], []>} : vector<16x32xf32>, vector<32x16xf32>, vector<16x16xf32> -> vector<16x16xf32>
    %212 = arith.addf %207, %211 : vector<16x16xf32>
    %213 = vector.extract_strided_slice %189 {offsets = [4, 0], sizes = [16, 32], strides = [1, 1]} : vector<22x32xf32> to vector<16x32xf32>
    %c4 = arith.constant 4 : index
    %c0_84 = arith.constant 0 : index
    %c0_85 = arith.constant 0 : index
    %214 = vector.load %arg2[%c4, %c0_84, %c0_85] : memref<7x32x16xf32, #tpu.memory_space<vmem>>, vector<1x32x16xf32>
    %215 = vector.shape_cast %214 : vector<1x32x16xf32> to vector<32x16xf32>
    %cst_86 = arith.constant dense<0.000000e+00> : vector<16x16xf32>
    %216 = tpu.matmul %213, %215, %cst_86 {dimension_numbers = #tpu.dot_dimension_numbers<[1], [0], [0], [1], [0, 0, 1, 1], [], []>} : vector<16x32xf32>, vector<32x16xf32>, vector<16x16xf32> -> vector<16x16xf32>
    %217 = arith.addf %212, %216 : vector<16x16xf32>
    %218 = vector.extract_strided_slice %189 {offsets = [5, 0], sizes = [16, 32], strides = [1, 1]} : vector<22x32xf32> to vector<16x32xf32>
    %c5 = arith.constant 5 : index
    %c0_87 = arith.constant 0 : index
    %c0_88 = arith.constant 0 : index
    %219 = vector.load %arg2[%c5, %c0_87, %c0_88] : memref<7x32x16xf32, #tpu.memory_space<vmem>>, vector<1x32x16xf32>
    %220 = vector.shape_cast %219 : vector<1x32x16xf32> to vector<32x16xf32>
    %cst_89 = arith.constant dense<0.000000e+00> : vector<16x16xf32>
    %221 = tpu.matmul %218, %220, %cst_89 {dimension_numbers = #tpu.dot_dimension_numbers<[1], [0], [0], [1], [0, 0, 1, 1], [], []>} : vector<16x32xf32>, vector<32x16xf32>, vector<16x16xf32> -> vector<16x16xf32>
    %222 = arith.addf %217, %221 : vector<16x16xf32>
    %223 = vector.extract_strided_slice %189 {offsets = [6, 0], sizes = [16, 32], strides = [1, 1]} : vector<22x32xf32> to vector<16x32xf32>
    %c6 = arith.constant 6 : index
    %c0_90 = arith.constant 0 : index
    %c0_91 = arith.constant 0 : index
    %224 = vector.load %arg2[%c6, %c0_90, %c0_91] : memref<7x32x16xf32, #tpu.memory_space<vmem>>, vector<1x32x16xf32>
    %225 = vector.shape_cast %224 : vector<1x32x16xf32> to vector<32x16xf32>
    %cst_92 = arith.constant dense<0.000000e+00> : vector<16x16xf32>
    %226 = tpu.matmul %223, %225, %cst_92 {dimension_numbers = #tpu.dot_dimension_numbers<[1], [0], [0], [1], [0, 0, 1, 1], [], []>} : vector<16x32xf32>, vector<32x16xf32>, vector<16x16xf32> -> vector<16x16xf32>
    %227 = arith.addf %222, %226 : vector<16x16xf32>
    %228 = arith.negf %227 : vector<16x16xf32>
    %229 = math.exp %228 : vector<16x16xf32>
    %cst_93 = arith.constant 1.000000e+00 : f32
    %230 = vector.broadcast %cst_93 : f32 to vector<16x16xf32>
    %231 = arith.addf %230, %229 : vector<16x16xf32>
    %232 = arith.divf %230, %231 : vector<16x16xf32>
    %c1_94 = arith.constant 1 : index
    %233 = memref.load %arg7[%c1_94] : memref<3xf32, #tpu.memory_space<smem>>
    %234 = tpu.concatenate %174, %181 in 1 : vector<8x16xf32>, vector<8x16xf32> -> vector<8x32xf32>
    %cst_95 = arith.constant 0.000000e+00 : f32
    %235 = vector.broadcast %cst_95 : f32 to vector<3x32xf32>
    %236 = tpu.concatenate %235, %234, %235 in 0 : vector<3x32xf32>, vector<8x32xf32>, vector<3x32xf32> -> vector<14x32xf32>
    %cst_96 = arith.constant 0.000000e+00 : f32
    %237 = vector.broadcast %cst_96 : f32 to vector<8x16xf32>
    %238 = vector.broadcast %233 : f32 to vector<8x16xf32>
    %239 = arith.addf %237, %238 : vector<8x16xf32>
    %240 = vector.extract_strided_slice %236 {offsets = [0, 0], sizes = [8, 32], strides = [1, 1]} : vector<14x32xf32> to vector<8x32xf32>
    %c0_97 = arith.constant 0 : index
    %c0_98 = arith.constant 0 : index
    %c0_99 = arith.constant 0 : index
    %241 = vector.load %arg3[%c0_97, %c0_98, %c0_99] : memref<7x32x16xf32, #tpu.memory_space<vmem>>, vector<1x32x16xf32>
    %242 = vector.shape_cast %241 : vector<1x32x16xf32> to vector<32x16xf32>
    %cst_100 = arith.constant dense<0.000000e+00> : vector<8x16xf32>
    %243 = tpu.matmul %240, %242, %cst_100 {dimension_numbers = #tpu.dot_dimension_numbers<[1], [0], [0], [1], [0, 0, 1, 1], [], []>} : vector<8x32xf32>, vector<32x16xf32>, vector<8x16xf32> -> vector<8x16xf32>
    %244 = arith.addf %239, %243 : vector<8x16xf32>
    %245 = vector.extract_strided_slice %236 {offsets = [1, 0], sizes = [8, 32], strides = [1, 1]} : vector<14x32xf32> to vector<8x32xf32>
    %c1_101 = arith.constant 1 : index
    %c0_102 = arith.constant 0 : index
    %c0_103 = arith.constant 0 : index
    %246 = vector.load %arg3[%c1_101, %c0_102, %c0_103] : memref<7x32x16xf32, #tpu.memory_space<vmem>>, vector<1x32x16xf32>
    %247 = vector.shape_cast %246 : vector<1x32x16xf32> to vector<32x16xf32>
    %cst_104 = arith.constant dense<0.000000e+00> : vector<8x16xf32>
    %248 = tpu.matmul %245, %247, %cst_104 {dimension_numbers = #tpu.dot_dimension_numbers<[1], [0], [0], [1], [0, 0, 1, 1], [], []>} : vector<8x32xf32>, vector<32x16xf32>, vector<8x16xf32> -> vector<8x16xf32>
    %249 = arith.addf %244, %248 : vector<8x16xf32>
    %250 = vector.extract_strided_slice %236 {offsets = [2, 0], sizes = [8, 32], strides = [1, 1]} : vector<14x32xf32> to vector<8x32xf32>
    %c2_105 = arith.constant 2 : index
    %c0_106 = arith.constant 0 : index
    %c0_107 = arith.constant 0 : index
    %251 = vector.load %arg3[%c2_105, %c0_106, %c0_107] : memref<7x32x16xf32, #tpu.memory_space<vmem>>, vector<1x32x16xf32>
    %252 = vector.shape_cast %251 : vector<1x32x16xf32> to vector<32x16xf32>
    %cst_108 = arith.constant dense<0.000000e+00> : vector<8x16xf32>
    %253 = tpu.matmul %250, %252, %cst_108 {dimension_numbers = #tpu.dot_dimension_numbers<[1], [0], [0], [1], [0, 0, 1, 1], [], []>} : vector<8x32xf32>, vector<32x16xf32>, vector<8x16xf32> -> vector<8x16xf32>
    %254 = arith.addf %249, %253 : vector<8x16xf32>
    %255 = vector.extract_strided_slice %236 {offsets = [3, 0], sizes = [8, 32], strides = [1, 1]} : vector<14x32xf32> to vector<8x32xf32>
    %c3_109 = arith.constant 3 : index
    %c0_110 = arith.constant 0 : index
    %c0_111 = arith.constant 0 : index
    %256 = vector.load %arg3[%c3_109, %c0_110, %c0_111] : memref<7x32x16xf32, #tpu.memory_space<vmem>>, vector<1x32x16xf32>
    %257 = vector.shape_cast %256 : vector<1x32x16xf32> to vector<32x16xf32>
    %cst_112 = arith.constant dense<0.000000e+00> : vector<8x16xf32>
    %258 = tpu.matmul %255, %257, %cst_112 {dimension_numbers = #tpu.dot_dimension_numbers<[1], [0], [0], [1], [0, 0, 1, 1], [], []>} : vector<8x32xf32>, vector<32x16xf32>, vector<8x16xf32> -> vector<8x16xf32>
    %259 = arith.addf %254, %258 : vector<8x16xf32>
    %260 = vector.extract_strided_slice %236 {offsets = [4, 0], sizes = [8, 32], strides = [1, 1]} : vector<14x32xf32> to vector<8x32xf32>
    %c4_113 = arith.constant 4 : index
    %c0_114 = arith.constant 0 : index
    %c0_115 = arith.constant 0 : index
    %261 = vector.load %arg3[%c4_113, %c0_114, %c0_115] : memref<7x32x16xf32, #tpu.memory_space<vmem>>, vector<1x32x16xf32>
    %262 = vector.shape_cast %261 : vector<1x32x16xf32> to vector<32x16xf32>
    %cst_116 = arith.constant dense<0.000000e+00> : vector<8x16xf32>
    %263 = tpu.matmul %260, %262, %cst_116 {dimension_numbers = #tpu.dot_dimension_numbers<[1], [0], [0], [1], [0, 0, 1, 1], [], []>} : vector<8x32xf32>, vector<32x16xf32>, vector<8x16xf32> -> vector<8x16xf32>
    %264 = arith.addf %259, %263 : vector<8x16xf32>
    %265 = vector.extract_strided_slice %236 {offsets = [5, 0], sizes = [8, 32], strides = [1, 1]} : vector<14x32xf32> to vector<8x32xf32>
    %c5_117 = arith.constant 5 : index
    %c0_118 = arith.constant 0 : index
    %c0_119 = arith.constant 0 : index
    %266 = vector.load %arg3[%c5_117, %c0_118, %c0_119] : memref<7x32x16xf32, #tpu.memory_space<vmem>>, vector<1x32x16xf32>
    %267 = vector.shape_cast %266 : vector<1x32x16xf32> to vector<32x16xf32>
    %cst_120 = arith.constant dense<0.000000e+00> : vector<8x16xf32>
    %268 = tpu.matmul %265, %267, %cst_120 {dimension_numbers = #tpu.dot_dimension_numbers<[1], [0], [0], [1], [0, 0, 1, 1], [], []>} : vector<8x32xf32>, vector<32x16xf32>, vector<8x16xf32> -> vector<8x16xf32>
    %269 = arith.addf %264, %268 : vector<8x16xf32>
    %270 = vector.extract_strided_slice %236 {offsets = [6, 0], sizes = [8, 32], strides = [1, 1]} : vector<14x32xf32> to vector<8x32xf32>
    %c6_121 = arith.constant 6 : index
    %c0_122 = arith.constant 0 : index
    %c0_123 = arith.constant 0 : index
    %271 = vector.load %arg3[%c6_121, %c0_122, %c0_123] : memref<7x32x16xf32, #tpu.memory_space<vmem>>, vector<1x32x16xf32>
    %272 = vector.shape_cast %271 : vector<1x32x16xf32> to vector<32x16xf32>
    %cst_124 = arith.constant dense<0.000000e+00> : vector<8x16xf32>
    %273 = tpu.matmul %270, %272, %cst_124 {dimension_numbers = #tpu.dot_dimension_numbers<[1], [0], [0], [1], [0, 0, 1, 1], [], []>} : vector<8x32xf32>, vector<32x16xf32>, vector<8x16xf32> -> vector<8x16xf32>
    %274 = arith.addf %269, %273 : vector<8x16xf32>
    %275 = arith.negf %274 : vector<8x16xf32>
    %276 = math.exp %275 : vector<8x16xf32>
    %cst_125 = arith.constant 1.000000e+00 : f32
    %277 = vector.broadcast %cst_125 : f32 to vector<8x16xf32>
    %278 = arith.addf %277, %276 : vector<8x16xf32>
    %279 = arith.divf %277, %278 : vector<8x16xf32>
    %c2_126 = arith.constant 2 : index
    %280 = memref.load %arg7[%c2_126] : memref<3xf32, #tpu.memory_space<smem>>
    %281 = tpu.concatenate %182, %185 in 1 : vector<8x16xf32>, vector<8x16xf32> -> vector<8x32xf32>
    %cst_127 = arith.constant 0.000000e+00 : f32
    %282 = vector.broadcast %cst_127 : f32 to vector<3x32xf32>
    %283 = tpu.concatenate %282, %281, %282 in 0 : vector<3x32xf32>, vector<8x32xf32>, vector<3x32xf32> -> vector<14x32xf32>
    %cst_128 = arith.constant 0.000000e+00 : f32
    %284 = vector.broadcast %cst_128 : f32 to vector<8x16xf32>
    %285 = vector.broadcast %280 : f32 to vector<8x16xf32>
    %286 = arith.addf %284, %285 : vector<8x16xf32>
    %287 = vector.extract_strided_slice %283 {offsets = [0, 0], sizes = [8, 32], strides = [1, 1]} : vector<14x32xf32> to vector<8x32xf32>
    %c0_129 = arith.constant 0 : index
    %c0_130 = arith.constant 0 : index
    %c0_131 = arith.constant 0 : index
    %288 = vector.load %arg4[%c0_129, %c0_130, %c0_131] : memref<7x32x16xf32, #tpu.memory_space<vmem>>, vector<1x32x16xf32>
    %289 = vector.shape_cast %288 : vector<1x32x16xf32> to vector<32x16xf32>
    %cst_132 = arith.constant dense<0.000000e+00> : vector<8x16xf32>
    %290 = tpu.matmul %287, %289, %cst_132 {dimension_numbers = #tpu.dot_dimension_numbers<[1], [0], [0], [1], [0, 0, 1, 1], [], []>} : vector<8x32xf32>, vector<32x16xf32>, vector<8x16xf32> -> vector<8x16xf32>
    %291 = arith.addf %286, %290 : vector<8x16xf32>
    %292 = vector.extract_strided_slice %283 {offsets = [1, 0], sizes = [8, 32], strides = [1, 1]} : vector<14x32xf32> to vector<8x32xf32>
    %c1_133 = arith.constant 1 : index
    %c0_134 = arith.constant 0 : index
    %c0_135 = arith.constant 0 : index
    %293 = vector.load %arg4[%c1_133, %c0_134, %c0_135] : memref<7x32x16xf32, #tpu.memory_space<vmem>>, vector<1x32x16xf32>
    %294 = vector.shape_cast %293 : vector<1x32x16xf32> to vector<32x16xf32>
    %cst_136 = arith.constant dense<0.000000e+00> : vector<8x16xf32>
    %295 = tpu.matmul %292, %294, %cst_136 {dimension_numbers = #tpu.dot_dimension_numbers<[1], [0], [0], [1], [0, 0, 1, 1], [], []>} : vector<8x32xf32>, vector<32x16xf32>, vector<8x16xf32> -> vector<8x16xf32>
    %296 = arith.addf %291, %295 : vector<8x16xf32>
    %297 = vector.extract_strided_slice %283 {offsets = [2, 0], sizes = [8, 32], strides = [1, 1]} : vector<14x32xf32> to vector<8x32xf32>
    %c2_137 = arith.constant 2 : index
    %c0_138 = arith.constant 0 : index
    %c0_139 = arith.constant 0 : index
    %298 = vector.load %arg4[%c2_137, %c0_138, %c0_139] : memref<7x32x16xf32, #tpu.memory_space<vmem>>, vector<1x32x16xf32>
    %299 = vector.shape_cast %298 : vector<1x32x16xf32> to vector<32x16xf32>
    %cst_140 = arith.constant dense<0.000000e+00> : vector<8x16xf32>
    %300 = tpu.matmul %297, %299, %cst_140 {dimension_numbers = #tpu.dot_dimension_numbers<[1], [0], [0], [1], [0, 0, 1, 1], [], []>} : vector<8x32xf32>, vector<32x16xf32>, vector<8x16xf32> -> vector<8x16xf32>
    %301 = arith.addf %296, %300 : vector<8x16xf32>
    %302 = vector.extract_strided_slice %283 {offsets = [3, 0], sizes = [8, 32], strides = [1, 1]} : vector<14x32xf32> to vector<8x32xf32>
    %c3_141 = arith.constant 3 : index
    %c0_142 = arith.constant 0 : index
    %c0_143 = arith.constant 0 : index
    %303 = vector.load %arg4[%c3_141, %c0_142, %c0_143] : memref<7x32x16xf32, #tpu.memory_space<vmem>>, vector<1x32x16xf32>
    %304 = vector.shape_cast %303 : vector<1x32x16xf32> to vector<32x16xf32>
    %cst_144 = arith.constant dense<0.000000e+00> : vector<8x16xf32>
    %305 = tpu.matmul %302, %304, %cst_144 {dimension_numbers = #tpu.dot_dimension_numbers<[1], [0], [0], [1], [0, 0, 1, 1], [], []>} : vector<8x32xf32>, vector<32x16xf32>, vector<8x16xf32> -> vector<8x16xf32>
    %306 = arith.addf %301, %305 : vector<8x16xf32>
    %307 = vector.extract_strided_slice %283 {offsets = [4, 0], sizes = [8, 32], strides = [1, 1]} : vector<14x32xf32> to vector<8x32xf32>
    %c4_145 = arith.constant 4 : index
    %c0_146 = arith.constant 0 : index
    %c0_147 = arith.constant 0 : index
    %308 = vector.load %arg4[%c4_145, %c0_146, %c0_147] : memref<7x32x16xf32, #tpu.memory_space<vmem>>, vector<1x32x16xf32>
    %309 = vector.shape_cast %308 : vector<1x32x16xf32> to vector<32x16xf32>
    %cst_148 = arith.constant dense<0.000000e+00> : vector<8x16xf32>
    %310 = tpu.matmul %307, %309, %cst_148 {dimension_numbers = #tpu.dot_dimension_numbers<[1], [0], [0], [1], [0, 0, 1, 1], [], []>} : vector<8x32xf32>, vector<32x16xf32>, vector<8x16xf32> -> vector<8x16xf32>
    %311 = arith.addf %306, %310 : vector<8x16xf32>
    %312 = vector.extract_strided_slice %283 {offsets = [5, 0], sizes = [8, 32], strides = [1, 1]} : vector<14x32xf32> to vector<8x32xf32>
    %c5_149 = arith.constant 5 : index
    %c0_150 = arith.constant 0 : index
    %c0_151 = arith.constant 0 : index
    %313 = vector.load %arg4[%c5_149, %c0_150, %c0_151] : memref<7x32x16xf32, #tpu.memory_space<vmem>>, vector<1x32x16xf32>
    %314 = vector.shape_cast %313 : vector<1x32x16xf32> to vector<32x16xf32>
    %cst_152 = arith.constant dense<0.000000e+00> : vector<8x16xf32>
    %315 = tpu.matmul %312, %314, %cst_152 {dimension_numbers = #tpu.dot_dimension_numbers<[1], [0], [0], [1], [0, 0, 1, 1], [], []>} : vector<8x32xf32>, vector<32x16xf32>, vector<8x16xf32> -> vector<8x16xf32>
    %316 = arith.addf %311, %315 : vector<8x16xf32>
    %317 = vector.extract_strided_slice %283 {offsets = [6, 0], sizes = [8, 32], strides = [1, 1]} : vector<14x32xf32> to vector<8x32xf32>
    %c6_153 = arith.constant 6 : index
    %c0_154 = arith.constant 0 : index
    %c0_155 = arith.constant 0 : index
    %318 = vector.load %arg4[%c6_153, %c0_154, %c0_155] : memref<7x32x16xf32, #tpu.memory_space<vmem>>, vector<1x32x16xf32>
    %319 = vector.shape_cast %318 : vector<1x32x16xf32> to vector<32x16xf32>
    %cst_156 = arith.constant dense<0.000000e+00> : vector<8x16xf32>
    %320 = tpu.matmul %317, %319, %cst_156 {dimension_numbers = #tpu.dot_dimension_numbers<[1], [0], [0], [1], [0, 0, 1, 1], [], []>} : vector<8x32xf32>, vector<32x16xf32>, vector<8x16xf32> -> vector<8x16xf32>
    %321 = arith.addf %316, %320 : vector<8x16xf32>
    %322 = arith.negf %321 : vector<8x16xf32>
    %323 = math.exp %322 : vector<8x16xf32>
    %cst_157 = arith.constant 1.000000e+00 : f32
    %324 = vector.broadcast %cst_157 : f32 to vector<8x16xf32>
    %325 = arith.addf %324, %323 : vector<8x16xf32>
    %326 = arith.divf %324, %325 : vector<8x16xf32>
    %327 = vector.extract_strided_slice %232 {offsets = [0, 0], sizes = [1, 16], strides = [1, 1]} : vector<16x16xf32> to vector<1x16xf32>
    %328 = vector.extract_strided_slice %232 {offsets = [1, 0], sizes = [1, 16], strides = [1, 1]} : vector<16x16xf32> to vector<1x16xf32>
    %329 = vector.extract_strided_slice %232 {offsets = [2, 0], sizes = [1, 16], strides = [1, 1]} : vector<16x16xf32> to vector<1x16xf32>
    %330 = vector.extract_strided_slice %232 {offsets = [3, 0], sizes = [1, 16], strides = [1, 1]} : vector<16x16xf32> to vector<1x16xf32>
    %331 = vector.extract_strided_slice %232 {offsets = [4, 0], sizes = [1, 16], strides = [1, 1]} : vector<16x16xf32> to vector<1x16xf32>
    %332 = vector.extract_strided_slice %232 {offsets = [5, 0], sizes = [1, 16], strides = [1, 1]} : vector<16x16xf32> to vector<1x16xf32>
    %333 = vector.extract_strided_slice %232 {offsets = [6, 0], sizes = [1, 16], strides = [1, 1]} : vector<16x16xf32> to vector<1x16xf32>
    %334 = vector.extract_strided_slice %232 {offsets = [7, 0], sizes = [1, 16], strides = [1, 1]} : vector<16x16xf32> to vector<1x16xf32>
    %335 = vector.extract_strided_slice %232 {offsets = [8, 0], sizes = [1, 16], strides = [1, 1]} : vector<16x16xf32> to vector<1x16xf32>
    %336 = vector.extract_strided_slice %232 {offsets = [9, 0], sizes = [1, 16], strides = [1, 1]} : vector<16x16xf32> to vector<1x16xf32>
    %337 = vector.extract_strided_slice %232 {offsets = [10, 0], sizes = [1, 16], strides = [1, 1]} : vector<16x16xf32> to vector<1x16xf32>
    %338 = vector.extract_strided_slice %232 {offsets = [11, 0], sizes = [1, 16], strides = [1, 1]} : vector<16x16xf32> to vector<1x16xf32>
    %339 = vector.extract_strided_slice %232 {offsets = [12, 0], sizes = [1, 16], strides = [1, 1]} : vector<16x16xf32> to vector<1x16xf32>
    %340 = vector.extract_strided_slice %232 {offsets = [13, 0], sizes = [1, 16], strides = [1, 1]} : vector<16x16xf32> to vector<1x16xf32>
    %341 = vector.extract_strided_slice %232 {offsets = [14, 0], sizes = [1, 16], strides = [1, 1]} : vector<16x16xf32> to vector<1x16xf32>
    %342 = vector.extract_strided_slice %232 {offsets = [15, 0], sizes = [1, 16], strides = [1, 1]} : vector<16x16xf32> to vector<1x16xf32>
    %343 = tpu.concatenate %327, %328, %329, %330, %331, %332, %333, %334, %335, %336, %337, %338, %339, %340, %341, %342 in 1 : vector<1x16xf32>, vector<1x16xf32>, vector<1x16xf32>, vector<1x16xf32>, vector<1x16xf32>, vector<1x16xf32>, vector<1x16xf32>, vector<1x16xf32>, vector<1x16xf32>, vector<1x16xf32>, vector<1x16xf32>, vector<1x16xf32>, vector<1x16xf32>, vector<1x16xf32>, vector<1x16xf32>, vector<1x16xf32> -> vector<1x256xf32>
    %c0_158 = arith.constant 0 : index
    %c0_159 = arith.constant 0 : index
    %344 = vector.load %arg5[%c0_158, %c0_159] : memref<16x256xf32, #tpu.memory_space<vmem>>, vector<16x256xf32>
    %cst_160 = arith.constant dense<0.000000e+00> : vector<8x256xf32>
    %345 = tpu.matmul %279, %344, %cst_160 {dimension_numbers = #tpu.dot_dimension_numbers<[1], [0], [0], [1], [0, 0, 1, 1], [], []>} : vector<8x16xf32>, vector<16x256xf32>, vector<8x256xf32> -> vector<8x256xf32>
    %c0_161 = arith.constant 0 : index
    %c0_162 = arith.constant 0 : index
    %346 = vector.load %arg6[%c0_161, %c0_162] : memref<16x256xf32, #tpu.memory_space<vmem>>, vector<16x256xf32>
    %cst_163 = arith.constant dense<0.000000e+00> : vector<8x256xf32>
    %347 = tpu.matmul %326, %346, %cst_163 {dimension_numbers = #tpu.dot_dimension_numbers<[1], [0], [0], [1], [0, 0, 1, 1], [], []>} : vector<8x16xf32>, vector<16x256xf32>, vector<8x256xf32> -> vector<8x256xf32>
    %348 = vector.broadcast %343 : vector<1x256xf32> to vector<8x256xf32>
    %349 = arith.addf %348, %345 : vector<8x256xf32>
    %350 = arith.addf %349, %347 : vector<8x256xf32>
    %cst_164 = arith.constant 0.333333343 : f32
    %351 = vector.broadcast %cst_164 : f32 to vector<8x256xf32>
    %352 = arith.mulf %350, %351 : vector<8x256xf32>
    %353 = arith.mulf %1, %352 : vector<8x256xf32>
    %c0_165 = arith.constant 0 : index
    %c0_166 = arith.constant 0 : index
    %c0_167 = arith.constant 0 : index
    %354 = vector.load %arg8[%c0_165, %c0_166, %c0_167] : memref<1x8x256xf32, #tpu.memory_space<vmem>>, vector<1x8x256xf32>
    %355 = vector.shape_cast %354 : vector<1x8x256xf32> to vector<8x256xf32>
    %356 = vector.shape_cast %353 : vector<8x256xf32> to vector<1x8x256xf32>
    tpu.vector_store %arg8[%c0_165, %c0_166, %c0_167], %356 {strides = array<i32>} : memref<1x8x256xf32, #tpu.memory_space<vmem>>, vector<1x8x256xf32>,
    return
  }
  func.func @transform_0(%arg0: i32) -> (i32, i32, i32) {
    %c0_i32 = arith.constant 0 : i32
    %c0_i32_0 = arith.constant 0 : i32
    %c0_i32_1 = arith.constant 0 : i32
    return %arg0, %c0_i32, %c0_i32_0 : i32, i32, i32
  }
  func.func @transform_1(%arg0: i32) -> (i32, i32, i32) {
    %c0_i32 = arith.constant 0 : i32
    %c0_i32_0 = arith.constant 0 : i32
    %c0_i32_1 = arith.constant 0 : i32
    %c0_i32_2 = arith.constant 0 : i32
    return %c0_i32, %c0_i32_0, %c0_i32_1 : i32, i32, i32
  }
  func.func @transform_2(%arg0: i32) -> (i32, i32, i32) {
    %c0_i32 = arith.constant 0 : i32
    %c0_i32_0 = arith.constant 0 : i32
    %c0_i32_1 = arith.constant 0 : i32
    %c0_i32_2 = arith.constant 0 : i32
    return %c0_i32, %c0_i32_0, %c0_i32_1 : i32, i32, i32
  }
  func.func @transform_3(%arg0: i32) -> (i32, i32, i32) {
    %c0_i32 = arith.constant 0 : i32
    %c0_i32_0 = arith.constant 0 : i32
    %c0_i32_1 = arith.constant 0 : i32
    %c0_i32_2 = arith.constant 0 : i32
    return %c0_i32, %c0_i32_0, %c0_i32_1 : i32, i32, i32
  }
  func.func @transform_4(%arg0: i32) -> (i32, i32) {
    %c0_i32 = arith.constant 0 : i32
    %c0_i32_0 = arith.constant 0 : i32
    %c0_i32_1 = arith.constant 0 : i32
    return %c0_i32, %c0_i32_0 : i32, i32
  }
  func.func @transform_5(%arg0: i32) -> (i32, i32) {
    %c0_i32 = arith.constant 0 : i32
    %c0_i32_0 = arith.constant 0 : i32
    %c0_i32_1 = arith.constant 0 : i32
    return %c0_i32, %c0_i32_0 : i32, i32
  }
  func.func @transform_6(%arg0: i32) -> i32 {
    %c0_i32 = arith.constant 0 : i32
    %c0_i32_0 = arith.constant 0 : i32
    return %c0_i32 : i32
  }
  func.func @transform_7(%arg0: i32) -> (i32, i32, i32) {
    %c0_i32 = arith.constant 0 : i32
    %c0_i32_0 = arith.constant 0 : i32
    %c0_i32_1 = arith.constant 0 : i32
    return %arg0, %c0_i32, %c0_i32_0 : i32, i32, i32
  }
}

</mosaic_0001>

<bundles_post_ra>
// kernel: tpu_custom_call.1
= control target key start
LH: loop header
LB: loop body
LE: loop exit
PB: predicated region body
PF: predicated region fallthrough
CT: control target
= control target key end

     0   :  { %12 = vsyncpa [#allocation4], 0  ;;  %s4862_s0 = inlined_call_operand.vmem [shape: f32[2,8,256], index: 0, kind: input, shape index: {}]   ;;  %s4863_s1 = inlined_call_operand.vmem [shape: f32[7,32,16], index: 1, kind: input, shape index: {}]   ;;  %s4864_s2 = inlined_call_operand.vmem [shape: f32[7,32,16], index: 2, kind: input, shape index: {}]   ;;  %s4865_s3 = inlined_call_operand.vmem [shape: f32[7,32,16], index: 3, kind: input, shape index: {}]   ;;  %s4866_s4 = inlined_call_operand.vmem [shape: f32[16,256], index: 4, kind: input, shape index: {}]   ;;  %s4867_s5 = inlined_call_operand.vmem [shape: f32[16,256], index: 5, kind: input, shape index: {}]   ;;  %s4868_s6 = inlined_call_operand.vmem [shape: f32[3], index: 6, kind: input, shape index: {}]   ;;  %s4869_s7 = inlined_call_operand.hbm [shape: f32[2,8,256], index: 7, kind: output, shape index: {}]  }
   0x1   :  { %13 = vsyncpa [#allocation3], 0 }
   0x2   :  { %15 = vsyncpa [#allocation3 + $0x1], 0  ;;  %s3918_s24 = smov 0   ;;  %s3920_s25 = smov 0  }
   0x3   :  { %s3922_s26 = smov 0   ;;  %s3924_s27 = smov 0  }
   0x4 LB: > { %s3939_s28 = sadd.s32 4294967295, %s3864_s27   ;;  %s3046_s29 = sadd.s32 4294967294, %s3864_s27   ;;  %s3864_s27 = sphi %s3924_s27, %s4916_s27   ;;  %s3860_s26 = sphi %s3922_s26, %s4915_s26   ;;  %s3856_s25 = sphi %s3920_s25, %s4914_s25   ;;  %s3852_s24 = sphi %s3918_s24, %s4913_s24  }
   0x5   : > { %s3943_s30 = sadd.s32 1, %s3864_s27   ;;  %s180_s8 = sadd.s32 1, %s3860_s26 }
   0x6   : > { %s177_s9 = ssub.s32 %s3864_s27, %s3943_s30  ;;  %p190_p0 = scmp.ne.s32.totalorder %s3860_s26, %s3856_s25 }
   0x7   : > { %p178_p1 = scmp.eq.s32.totalorder %s177_s9, 0  ;;  %p191_p2 = scmp.eq.s32.totalorder %s3939_s28, 1 }
   0x8   : > { %p196_p3 = scmp.ne.s32.totalorder %s3856_s25, %s3852_s24  ;;  %p197_p4 = scmp.eq.s32.totalorder %s3046_s29, 1 }
   0x9   : > { %s3954_s10 = scalar_select %p178_p1, %s3860_s26, %s180_s8  }
   0xa   : > { %p3956_p5 = por %p191_p2, %p190_p0  ;;  %p3960_p6 = por %p197_p4, %p196_p3 }
   0xb   : > { %p3047_p7 = scmp.ge.s32.totalorder %s3864_s27, 1  ;;  %p204_p8 = scmp.lt.s32.totalorder %s3864_s27, 3 }
   0xc   : > { %p3719_p9 = scmp.eq.s32.totalorder %s3939_s28, 0  ;;  %s232_s16 = sshll.u32 %s4868_s6, 4  ;;  %s233_s16 = int_to_ptr.vmem [resolvable:$true] %s232_s16 }
   0xd   : > { %p3967_p10 = pnand %p3047_p7, %p204_p8  ;;  %s3783_s17 = scalar_lea.vmem %s233_s16, 16 }
   0xe   : > { %p3784_p13 = scmp.ne.s32.totalorder %s233_s16, %s3783_s17  ;;  %p3791_p3 = scmp.lt.s32.totalorder %s233_s16, %s233_s16 }
   0xf   : > { %p3711_p11 = pneg %p3967_p10  ;;  %p3792_p4 = scmp.lt.s32.totalorder %s3783_s17, %s3783_s17 }
  0x11   : > { %p3712_p12 = pnand %p3719_p9, %p3711_p11  ;;  %p3793_p7 = por %p3792_p4, %p3791_p3 }
  0x13   : > { %p3785_p0 = pneg %p3712_p12 }
  0x15   : > { %p3786_p1 = pnand %p3785_p0, %p3784_p13 }
  0x17   : > { %p3787_p2 = pneg %p3786_p1 }
  0x19   : > { %p3794_p8 = pnand %p3793_p7, %p3787_p2 }
  0x1b   : > { %3797 = shalt.err (!%p3794_p8)
}
  0x1c   : > { %s3866_s18 = smov [#allocation2]   ;;  %253 = sbr.rel (%p3967_p10) target bundleno = 979 (0x3d3), region = 48 }
  0x1d   : > { %3714 = dma.vmem_to_smem (!%p3712_p12), %s233_s16, 16, %s3866_s18, [#allocation4]  }
  0x23   : > { %3843 = dma.done.wait (%p3719_p9), [#allocation4], 16  }
  0x24   : > { %3845 = vsyncadd (%p3719_p9), [#allocation4], 4294967280 }
  0x25   : > { %259 = sfence }
  0x26   : > { %p286_p11 = scmp.lt.s32.totalorder %s3939_s28, 1  ;;  %vm312_vm0 = vcmask 261248   ;;  %s4872_s29 = smov 112   ;;  %vm338_vm1 = vcmask 392448   ;;  %vm363_vm2 = vcmask 523648   ;;  %vm388_vm3 = vcmask 654848  }
  0x27   : > { %s4887_s8 = smov 80   ;;  %s4870_s9 = smov 96   ;;  %vm413_vm4 = vcmask 786048   ;;  %vm438_vm5 = vcmask 917248   ;;  %vm463_vm6 = vcmask 1048448   ;;  %vm293_vm7 = vcmask 130048  }
  0x28   : > { %s287_s19 = scalar_select %p286_p11, %s3939_s28, 1  ;;  %vm733_vm8 = vcmask 1040384   ;;  %vm4882_vm9 = vcmask 1041408   ;;  %vm737_vm10 = vcmask 1042432   ;;  %vm4881_vm11 = vcmask 1043456  }
  0x29   : > { %s3870_s13 = smov 64   ;;  %s3871_s14 = smov 48   ;;  %vm4883_vm12 = vcmask 1044480   ;;  %vm4884_vm13 = vcmask 1045504   ;;  %vm4886_vm14 = vcmask 1046528   ;;  %vm827_vm15 = vcmask 7168  }
  0x2a   : > { %s3168_s20 = sshll.u32 %s287_s19, 4  ;;  %s3872_s15 = smov 32  }
  0x2b   : > { %s3989_s23 = scalar_lea.vmem %s4862_s0, %s3168_s20  ;;  %s3873_s16 = smov 16  }
  0x2c   : > { %v3992_v0 = vld [vmem:[%s3989_s23] sm:$0xff]  ;;  %v3995_v1 = vld [vmem:[%s3989_s23 + $0x8] sm:$0xff]  ;;  %s4911_s21 = smov 112   ;;  %s3169_s19 = sshll.u32 %s3939_s28, 8 }
  0x2d   : > { %330 = vrot.lane.b32.xlu0 %v3992_v0, %s4872_s29  ;;  %380 = vrot.lane.b32.xlu1 %v3992_v0, %s4887_s8  ;;  %v515_v2 = vsel %vm312_vm0, %v3995_v1, 0.0  ;;  %v320_v3 = vsel %vm312_vm0, %v3992_v0, 0.0  ;;  %v540_v5 = vsel %vm338_vm1, %v3995_v1, 0.0  ;;  %v346_v7 = vsel %vm338_vm1, %v3992_v0, 0.0 }
  0x2e   : > { %v516_v4 = vrot.slane %v515_v2, 4  ;;  %v321_v6 = vrot.slane %v320_v3, 4  ;;  %v541_v8 = vrot.slane %v540_v5, 4  ;;  %v564_v9 = vsel %vm363_vm2, %v3995_v1, 0.0 }
  0x2f   : > { %v347_v12 = vrot.slane %v346_v7, 4  ;;  %v371_v13 = vsel %vm363_vm2, %v3992_v0, 0.0  ;;  %v565_v15 = vrot.slane %v564_v9, 4  ;;  %v588_v20 = vsel %vm388_vm3, %v3995_v1, 0.0 }
  0x30   : > { %v517_v10 = vadd.f32 %v516_v4, %v515_v2  ;;  %v322_v11 = vadd.f32 %v321_v6, %v320_v3  ;;  %v542_v14 = vadd.f32 %v541_v8, %v540_v5  ;;  %v372_v16 = vrot.slane %v371_v13, 4 }
  0x31   : > { %355 = vrot.lane.b32.xlu0 %v3992_v0, %s4870_s9  ;;  %405 = vrot.lane.b32.xlu1 %v3992_v0, %s3870_s13  ;;  %v348_v19 = vadd.f32 %v347_v12, %v346_v7  ;;  %v612_v21 = vsel %vm413_vm4, %v3995_v1, 0.0  ;;  %v396_v22 = vsel %vm388_vm3, %v3992_v0, 0.0  ;;  %v566_v24 = vadd.f32 %v565_v15, %v564_v9 }
  0x32   : > { %v518_v17 = vrot.slane %v517_v10, 2  ;;  %v323_v18 = vrot.slane %v322_v11, 2  ;;  %v543_v23 = vrot.slane %v542_v14, 2  ;;  %v589_v25 = vrot.slane %v588_v20, 4 }
  0x33   : > { %v373_v26 = vadd.f32 %v372_v16, %v371_v13  ;;  %v349_v29 = vrot.slane %v348_v19, 2  ;;  %v397_v30 = vrot.slane %v396_v22, 4  ;;  %v613_v31 = vrot.slane %v612_v21, 4 }
  0x34   : > { %v519_v27 = vadd.f32 %v518_v17, %v517_v10  ;;  %v324_v28 = vadd.f32 %v323_v18, %v322_v11  ;;  %v421_v32 = vsel %vm413_vm4, %v3992_v0, 0.0  ;;  %v544_v33 = vadd.f32 %v543_v23, %v542_v14 }
  0x35   : > { %430 = vrot.lane.b32.xlu0 %v3992_v0, %s3871_s14  ;;  %455 = vrot.lane.b32.xlu1 %v3992_v0, %s3872_s15  ;;  %v567_v34 = vrot.slane %v566_v24, 2  ;;  %v590_v35 = vadd.f32 %v589_v25, %v588_v20  ;;  %v374_v36 = vrot.slane %v373_v26, 2  ;;  %v350_v39 = vadd.f32 %v349_v29, %v348_v19 }
  0x36   : > { %v520_v37 = vrot.slane %v519_v27, 1  ;;  %v325_v38 = vrot.slane %v324_v28, 1  ;;  %v398_v40 = vadd.f32 %v397_v30, %v396_v22  ;;  %v636_v41 = vsel %vm438_vm5, %v3995_v1, 0.0 }
  0x37   : > { %v422_v42 = vrot.slane %v421_v32, 4  ;;  %v614_v43 = vadd.f32 %v613_v31, %v612_v21  ;;  %v446_v44 = vsel %vm438_vm5, %v3992_v0, 0.0  ;;  %v545_v45 = vrot.slane %v544_v33, 1 }
  0x38   : > { %v568_v46 = vadd.f32 %v567_v34, %v566_v24  ;;  %v591_v47 = vrot.slane %v590_v35, 2  ;;  %v375_v48 = vadd.f32 %v374_v36, %v373_v26  ;;  %v521_v49 = vadd.f32 %v520_v37, %v519_v27 }
  0x39   : > { %480 = vrot.lane.b32.xlu0 %v3992_v0, %s3873_s16  ;;  %525 = vrot.lane.b32.xlu1 %v3995_v1, %s4872_s29  ;;  %v326_v50 = vadd.f32 %v325_v38, %v324_v28  ;;  %v351_v51 = vrot.slane %v350_v39, 1  ;;  %v637_v52 = vrot.slane %v636_v41, 4  ;;  %v399_v53 = vrot.slane %v398_v40, 2 }
  0x3a   : > { %v423_v54 = vadd.f32 %v422_v42, %v421_v32  ;;  %v660_v55 = vsel %vm463_vm6, %v3995_v1, 0.0  ;;  %v447_v56 = vrot.slane %v446_v44, 4  ;;  %v471_v57 = vsel %vm463_vm6, %v3992_v0, 0.0 }
  0x3b   : > { %v546_v58 = vadd.f32 %v545_v45, %v544_v33  ;;  %v569_v59 = vrot.slane %v568_v46, 1  ;;  %v592_v60 = vadd.f32 %v591_v47, %v590_v35  ;;  %v615_v61 = vrot.slane %v614_v43, 2 }
  0x3c   : > { %v352_v62 = vadd.f32 %v351_v51, %v350_v39  ;;  %v376_v63 = vrot.slane %v375_v48, 1  ;;  %v638_v2 = vadd.f32 %v637_v52, %v636_v41  ;;  %v661_v3 = vrot.slane %v660_v55, 4 }
  0x3d   : > { %549 = vrot.lane.b32.xlu0 %v3995_v1, %s4870_s9  ;;  %573 = vrot.lane.b32.xlu1 %v3995_v1, %s4887_s8  ;;  %v400_v4 = vadd.f32 %v399_v53, %v398_v40  ;;  %v424_v5 = vrot.slane %v423_v54, 2  ;;  %v448_v6 = vadd.f32 %v447_v56, %v446_v44  ;;  %v472_v7 = vrot.slane %v471_v57, 4 }
  0x3e   : > { %v570_v8 = vadd.f32 %v569_v59, %v568_v46  ;;  %v616_v9 = vadd.f32 %v615_v61, %v614_v43  ;;  %v593_v10 = vrot.slane %v592_v60, 1  ;;  %v377_v11 = vadd.f32 %v376_v63, %v375_v48 }
  0x3f   : > { %v639_v12 = vrot.slane %v638_v2, 2  ;;  %v662_v13 = vadd.f32 %v661_v3, %v660_v55  ;;  %v401_v14 = vrot.slane %v400_v4, 1  ;;  %v425_v15 = vadd.f32 %v424_v5, %v423_v54 }
  0x40   : > { %v449_v16 = vrot.slane %v448_v6, 2  ;;  %v473_v17 = vadd.f32 %v472_v7, %v471_v57  ;;  %v594_v18 = vadd.f32 %v593_v10, %v592_v60  ;;  %v617_v19 = vrot.slane %v616_v9, 1 }
  0x41   : > { %597 = vrot.lane.b32.xlu0 %v3995_v1, %s3870_s13  ;;  %621 = vrot.lane.b32.xlu1 %v3995_v1, %s3871_s14  ;;  %v640_v20 = vadd.f32 %v639_v12, %v638_v2  ;;  %v663_v21 = vrot.slane %v662_v13, 2  ;;  %v402_v22 = vadd.f32 %v401_v14, %v400_v4  ;;  %v426_v23 = vrot.slane %v425_v15, 1 }
  0x42   : > { %v450_v24 = vadd.f32 %v449_v16, %v448_v6  ;;  %v474_v25 = vrot.slane %v473_v17, 2  ;;  %v618_v26 = vadd.f32 %v617_v19, %v616_v9  ;;  %v4069_v38 = vsel %vm293_vm7, %v3992_v0, 0.0 }
  0x43   : > { %v664_v27 = vadd.f32 %v663_v21, %v662_v13  ;;  %v641_v28 = vrot.slane %v640_v20, 1  ;;  %v427_v29 = vadd.f32 %v426_v23, %v425_v15  ;;  %v4074_v39 = vsel %vm293_vm7, %v3995_v1, 0.0 }
  0x44   : > { %v451_v30 = vrot.slane %v450_v24, 1  ;;  %v475_v31 = vadd.f32 %v474_v25, %v473_v17  ;;  %v4088_v9 = vsel %vm312_vm0, %v3992_v0, -inf  ;;  %v4095_v13 = vsel %vm338_vm1, %v3992_v0, -inf }
  0x45   : > { %645 = vrot.lane.b32.xlu0 %v3995_v1, %s3872_s15  ;;  %669 = vrot.lane.b32.xlu1 %v3995_v1, %s3873_s16  ;;  %v642_v32 = vadd.f32 %v641_v28, %v640_v20  ;;  %v665_v33 = vrot.slane %v664_v27, 1  ;;  %v314_v17 = vrot.slane %v4088_v9, 4  ;;  %v340_v23 = vrot.slane %v4095_v13, 4 }
  0x46   : > { %v452_v34 = vadd.f32 %v451_v30, %v450_v24  ;;  %v476_v35 = vrot.slane %v475_v31, 1  ;;  %v4103_v24 = vsel %vm338_vm1, %v3995_v1, -inf  ;;  %vm4874_vm1 = vcmask 23552  }
  0x47   : > { %v666_v36 = vadd.f32 %v665_v33, %v664_v27  ;;  %v315_v28 = vmax.f32 %v4088_v9, %v314_v17 }
  0x48   : > { %v477_v37 = vadd.f32 %v476_v35, %v475_v31  ;;  %v534_v35 = vrot.slane %v4103_v24, 4 }
  0x49   : > { %783 = vrot.lane.b32.xlu1 %v521_v49, %s4872_s29  ;;  %755 = vrot.lane.b32.xlu0 %v326_v50, %s4872_s29 }
  0x4d   : > { %787 = vrot.lane.b32.xlu1 %v546_v58, %s4870_s9  ;;  %759 = vrot.lane.b32.xlu0 %v352_v62, %s4870_s9 }
  0x51   : > { %791 = vrot.lane.b32.xlu1 %v570_v8, %s4887_s8  ;;  %763 = vrot.lane.b32.xlu0 %v377_v11, %s4887_s8 }
  0x55   : > { %795 = vrot.lane.b32.xlu1 %v594_v18, %s3870_s13  ;;  %767 = vrot.lane.b32.xlu0 %v402_v22, %s3870_s13 }
  0x59   : > { %799 = vrot.lane.b32.xlu1 %v618_v26, %s3871_s14  ;;  %771 = vrot.lane.b32.xlu0 %v427_v29, %s3871_s14 }
  0x5d   : > { %803 = vrot.lane.b32.xlu1 %v642_v32, %s3872_s15  ;;  %775 = vrot.lane.b32.xlu0 %v452_v34, %s3872_s15  ;;  %v341_v34 = vmax.f32 %v4095_v13, %v340_v23 }
  0x61   : > { %807 = vrot.lane.b32.xlu1 %v666_v36, %s3873_s16  ;;  %779 = vrot.lane.b32.xlu0 %v477_v37, %s3873_s16  ;;  %v4114_v36 = vsel %vm363_vm2, %v3995_v1, -inf  ;;  %v4118_v37 = vsel %vm312_vm0, %v3995_v1, -inf  ;;  %vm4876_vm0 = vcmask 15360  }
  0x80   : > { %310 = vadd.xlane.f32.xlu0 %v4069_v38 }
  0x85   : > { %504 = vadd.xlane.f32.xlu1 %v4074_v39 }
  0x9f   : > { %v331_v40 = vpop.permute.xlu0 %330  ;;  %v381_v41 = vpop.permute.xlu1 %380 }
  0xa0   : > { %v333_v42 = vsel %vm293_vm7, %v331_v40, 0.0  ;;  %v336_v43 = vmax.f32 %v3992_v0, %v331_v40  ;;  %v337_v44 = vadd.f32 %v331_v40, %v3992_v0  ;;  %v383_v53 = vsel %vm293_vm7, %v381_v41, 0.0 }
  0xa1   : > { %334 = vadd.xlane.f32.xlu1 %v333_v42 }
  0xa3   : > { %v356_v45 = vpop.permute.xlu0 %355  ;;  %v406_v46 = vpop.permute.xlu1 %405 }
  0xa4   : > { %v361_v47 = vmax.f32 %v336_v43, %v356_v45  ;;  %v362_v48 = vadd.f32 %v356_v45, %v337_v44  ;;  %v358_v49 = vsel %vm293_vm7, %v356_v45, 0.0  ;;  %v408_v50 = vsel %vm293_vm7, %v406_v46, 0.0 }
  0xa5   : > { %359 = vadd.xlane.f32.xlu0 %v358_v49  ;;  %409 = vadd.xlane.f32.xlu1 %v408_v50  ;;  %v316_v43 = vrot.slane %v315_v28, 2  ;;  %v496_v44 = vrot.slane %v4074_v39, 4  ;;  %v535_v49 = vmax.f32 %v4103_v24, %v534_v35  ;;  %v509_v50 = vrot.slane %v4118_v37, 4 }
  0xa6   : > { %v386_v51 = vmax.f32 %v361_v47, %v381_v41  ;;  %v387_v52 = vadd.f32 %v381_v41, %v362_v48  ;;  %v558_v47 = vrot.slane %v4114_v36, 4  ;;  %v342_v48 = vrot.slane %v341_v34, 2 }
  0xa7   : > { %v431_v54 = vpop.permute.xlu0 %430  ;;  %v456_v55 = vpop.permute.xlu1 %455 }
  0xa8   : > { %v411_v56 = vmax.f32 %v386_v51, %v406_v46  ;;  %v412_v57 = vadd.f32 %v406_v46, %v387_v52  ;;  %v458_v58 = vsel %vm293_vm7, %v456_v55, 0.0  ;;  %v433_v61 = vsel %vm293_vm7, %v431_v54, 0.0 }
  0xa9   : > { %384 = vadd.xlane.f32.xlu0 %v383_v53  ;;  %459 = vadd.xlane.f32.xlu1 %v458_v58  ;;  %v4129_v51 = vsel %vm388_vm3, %v3995_v1, -inf  ;;  %v4143_v58 = vsel %vm363_vm2, %v3992_v0, -inf  ;;  %vm4875_vm2 = vcmask 31744  }
  0xaa   : > { %v436_v59 = vmax.f32 %v411_v56, %v431_v54  ;;  %v437_v60 = vadd.f32 %v431_v54, %v412_v57  ;;  %v317_v56 = vmax.f32 %v315_v28, %v316_v43  ;;  %v497_v57 = vadd.f32 %v496_v44, %v4074_v39 }
  0xab   : > { %v481_v62 = vpop.permute.xlu0 %480  ;;  %v526_v63 = vpop.permute.xlu1 %525  ;;  %v4152_v39 = vsel %vm413_vm4, %v3995_v1, -inf  ;;  %v4184_v43 = vsel %vm463_vm6, %v3995_v1, -inf }
  0xac   : > { %v461_v2 = vmax.f32 %v436_v59, %v456_v55  ;;  %v462_v3 = vadd.f32 %v456_v55, %v437_v60  ;;  %v483_v6 = vsel %vm293_vm7, %v481_v62, 0.0  ;;  %v528_v16 = vsel %vm293_vm7, %v526_v63, 0.0 }
  0xad   : > { %434 = vadd.xlane.f32.xlu0 %v433_v61  ;;  %v302_v59 = vrot.slane %v4069_v38, 4  ;;  %v559_v60 = vmax.f32 %v4114_v36, %v558_v47  ;;  %v536_v61 = vrot.slane %v535_v49, 2  ;;  %v4188_v47 = vsel %vm438_vm5, %v3992_v0, -inf }
  0xae   : > { %v486_v4 = vmax.f32 %v461_v2, %v481_v62  ;;  %v487_v5 = vadd.f32 %v481_v62, %v462_v3  ;;  %v510_v62 = vmax.f32 %v4118_v37, %v509_v50  ;;  %v318_v2 = vrot.slane %v317_v56, 1 }
  0xaf   : > { %v550_v7 = vpop.permute.xlu0 %549  ;;  %v574_v8 = vpop.permute.xlu1 %573  ;;  %v343_v3 = vmax.f32 %v341_v34, %v342_v48 }
  0xb0   : > { %v506_v10 = vmax.f32 %v486_v4, %v3995_v1  ;;  %v507_v11 = vadd.f32 %v487_v5, %v3995_v1  ;;  %v552_v12 = vsel %vm293_vm7, %v550_v7, 0.0  ;;  %v576_v27 = vsel %vm293_vm7, %v574_v8, 0.0 }
  0xb1   : > { %553 = vadd.xlane.f32.xlu1 %v552_v12  ;;  %484 = vadd.xlane.f32.xlu0 %v483_v6  ;;  %v365_v4 = vrot.slane %v4143_v58, 4  ;;  %v498_v5 = vrot.slane %v497_v57, 2  ;;  %v537_v12 = vmax.f32 %v535_v49, %v536_v61  ;;  %v319_v17 = vmax.f32 %v317_v56, %v318_v2 }
  0xb2   : > { %v531_v14 = vmax.f32 %v506_v10, %v526_v63  ;;  %v532_v15 = vadd.f32 %v526_v63, %v507_v11  ;;  %v582_v63 = vrot.slane %v4129_v51, 4  ;;  %v560_v10 = vrot.slane %v559_v60, 2 }
  0xb3   : > { %v598_v18 = vpop.permute.xlu0 %597  ;;  %v622_v19 = vpop.permute.xlu1 %621  ;;  %v4161_v11 = vsel %vm388_vm3, %v3992_v0, -inf  ;;  %v440_v2 = vrot.slane %v4188_v47, 4  ;;  %vm4878_vm3 = vcmask 39936  }
  0xb4   : > { %v555_v20 = vmax.f32 %v531_v14, %v550_v7  ;;  %v556_v21 = vadd.f32 %v550_v7, %v532_v15  ;;  %v600_v22 = vsel %vm293_vm7, %v598_v18, 0.0  ;;  %v624_v42 = vsel %vm293_vm7, %v622_v19, 0.0 }
  0xb5   : > { %601 = vadd.xlane.f32.xlu1 %v600_v22  ;;  %529 = vadd.xlane.f32.xlu0 %v528_v16  ;;  %v303_v7 = vadd.f32 %v302_v59, %v4069_v38  ;;  %v511_v14 = vrot.slane %v510_v62, 2  ;;  %v583_v15 = vmax.f32 %v4129_v51, %v582_v63  ;;  %v606_v16 = vrot.slane %v4152_v39, 4 }
  0xb6   : > { %v579_v25 = vmax.f32 %v555_v20, %v574_v8  ;;  %v580_v26 = vadd.f32 %v574_v8, %v556_v21  ;;  %v499_v20 = vadd.f32 %v498_v5, %v497_v57  ;;  %v390_v38 = vrot.slane %v4161_v11, 4 }
  0xb7   : > { %v646_v29 = vpop.permute.xlu0 %645  ;;  %v4108_v33 = vpop.permute.xlu1 %669  ;;  %v4169_v21 = vsel %vm438_vm5, %v3995_v1, -inf  ;;  %v4173_v22 = vsel %vm413_vm4, %v3992_v0, -inf  ;;  %v304_v23 = vrot.slane %v303_v7, 2  ;;  %v512_v28 = vmax.f32 %v510_v62, %v511_v14 }
  0xb8   : > { %v603_v30 = vmax.f32 %v579_v25, %v598_v18  ;;  %v604_v31 = vadd.f32 %v598_v18, %v580_v26  ;;  %v648_v32 = vsel %vm293_vm7, %v646_v29, 0.0  ;;  %v672_v55 = vsel %vm293_vm7, %v4108_v33, 0.0 }
  0xb9   : > { %649 = vadd.xlane.f32.xlu1 %v648_v32  ;;  %577 = vadd.xlane.f32.xlu0 %v576_v27  ;;  %v344_v18 = vrot.slane %v343_v3, 1  ;;  %v561_v25 = vmax.f32 %v559_v60, %v560_v10  ;;  %v538_v27 = vrot.slane %v537_v12, 1  ;;  %v630_v35 = vrot.slane %v4169_v21, 4 }
  0xba   : > { %v627_v40 = vmax.f32 %v603_v30, %v622_v19  ;;  %v628_v41 = vadd.f32 %v622_v19, %v604_v31  ;;  %v366_v19 = vmax.f32 %v4143_v58, %v365_v4  ;;  %v607_v30 = vmax.f32 %v4152_v39, %v606_v16 }
  0xbb   : > { %v4136_v54 = vpop.permute.xlu1 %783  ;;  %v4154_v6 = vpop.permute.xlu0 %755  ;;  %v345_v32 = vmax.f32 %v343_v3, %v344_v18  ;;  %v305_v44 = vadd.f32 %v304_v23, %v303_v7  ;;  %v539_v48 = vmax.f32 %v537_v12, %v538_v27  ;;  %v513_v49 = vrot.slane %v512_v28, 1 }
  0xbc   : > { %v4122_v45 = vmax.f32 %v627_v40, %v646_v29  ;;  %v652_v46 = vadd.f32 %v646_v29, %v628_v41  ;;  %v584_v29 = vrot.slane %v583_v15, 2  ;;  %v367_v34 = vrot.slane %v366_v19, 2 }
  0xbd   : > { %625 = vadd.xlane.f32.xlu0 %v624_v42  ;;  %v415_v40 = vrot.slane %v4173_v22, 4  ;;  %v500_v41 = vrot.slane %v499_v20, 1  ;;  %v391_v42 = vmax.f32 %v4161_v11, %v390_v38  ;;  %v631_v57 = vmax.f32 %v4169_v21, %v630_v35 }
  0xbe   : > { %v675_v52 = vmax.f32 %v4122_v45, %v4108_v33  ;;  %v4134_v53 = vadd.f32 %v4108_v33, %v652_v46  ;;  %v562_v46 = vrot.slane %v561_v25, 1  ;;  %v585_v50 = vmax.f32 %v583_v15, %v584_v29 }
  0xbf   : > { %v4157_v8 = vpop.permute.xlu1 %787  ;;  %v4175_v26 = vpop.permute.xlu0 %759  ;;  %v368_v56 = vmax.f32 %v366_v19, %v367_v34  ;;  %v416_v59 = vmax.f32 %v4173_v22, %v415_v40  ;;  %v654_v60 = vrot.slane %v4184_v43, 4  ;;  %v501_v61 = vadd.f32 %v500_v41, %v499_v20 }
  0xc0   : > { %v392_v63 = vrot.slane %v391_v42, 2  ;;  %v306_v3 = vrot.slane %v305_v44, 1  ;;  %v4197_v5 = vsel %vm463_vm6, %v3992_v0, -inf  ;;  %v563_v7 = vmax.f32 %v561_v25, %v562_v46 }
  0xc1   : > { %673 = vadd.xlane.f32.xlu0 %v672_v55  ;;  %v608_v55 = vrot.slane %v607_v30, 2  ;;  %v514_v10 = vmax.f32 %v512_v28, %v513_v49  ;;  %v586_v12 = vrot.slane %v585_v50, 1  ;;  %v369_v15 = vrot.slane %v368_v56, 1 }
  0xc2   : > { %v632_v16 = vrot.slane %v631_v57, 2  ;;  %v655_v18 = vmax.f32 %v4184_v43, %v654_v60  ;;  %v817_v19 = vsel %vm733_vm8, %v501_v61, %v4136_v54  ;;  %v393_v20 = vmax.f32 %v391_v42, %v392_v63 }
  0xc3   : > { %v792_v31 = vpop.permute.xlu1 %791  ;;  %v764_v62 = vpop.permute.xlu0 %763  ;;  %v609_v14 = vmax.f32 %v607_v30, %v608_v55  ;;  %v441_v38 = vmax.f32 %v4188_v47, %v440_v2  ;;  %v465_v23 = vrot.slane %v4197_v5, 4  ;;  %v307_v27 = vadd.f32 %v306_v3, %v305_v44 }
  0xc4   : > { %v587_v28 = vmax.f32 %v585_v50, %v586_v12  ;;  %v818_v30 = vsel %vm4882_vm9, %v817_v19, %v4157_v8  ;;  %v633_v34 = vmax.f32 %v631_v57, %v632_v16  ;;  %v656_v40 = vrot.slane %v655_v18, 2 }
  0xc5   : > { %v610_v29 = vrot.slane %v609_v14, 1  ;;  %v370_v54 = vmax.f32 %v368_v56, %v369_v15  ;;  %v394_v41 = vrot.slane %v393_v20, 1  ;;  %v442_v42 = vrot.slane %v441_v38, 2 }
  0xc6   : > { %v466_v44 = vmax.f32 %v4197_v5, %v465_v23  ;;  %v810_v46 = vsel %vm733_vm8, %v307_v27, %v4154_v6  ;;  %v634_v49 = vrot.slane %v633_v34, 1  ;;  %v657_v55 = vmax.f32 %v655_v18, %v656_v40  ;;  %v896_v23 = vld [vmem:[%s4863_s1 + $0x8] sm:$0xff]  ;;  %v897_v40 = vld [vmem:[%s4863_s1 + $0x10] sm:$0xff] }
  0xc7   : > { %v796_v4 = vpop.permute.xlu1 %795  ;;  %v768_v25 = vpop.permute.xlu0 %767  ;;  %v611_v8 = vmax.f32 %v609_v14, %v610_v29  ;;  %v811_v57 = vsel %vm4882_vm9, %v810_v46, %v4175_v26  ;;  %v443_v60 = vmax.f32 %v441_v38, %v442_v42  ;;  %v895_v38 = vld [vmem:[%s4863_s1] sm:$0xff]  ;;  %v3072_v46 = vld [vmem:[%s4863_s1 + $0x78] sm:$0xff]  ;;  %vm4877_vm4 = vcmask 48128  }
  0xc8   : > { %v467_v61 = vrot.slane %v466_v44, 2  ;;  %v812_v63 = vsel %vm737_vm10, %v811_v57, %v764_v62  ;;  %v635_v2 = vmax.f32 %v633_v34, %v634_v49  ;;  %v658_v3 = vrot.slane %v657_v55, 1  ;;  %v3070_v34 = vld [vmem:[%s4863_s1 + $0x68] sm:$0xff]  ;;  %v3057_v49 = vld [vmem:[%s4863_s1 + $0x20] sm:$0xff] }
  0xc9   : > { %v813_v14 = vsel %vm4881_vm11, %v812_v63, %v768_v25  ;;  %v3513_v27 = vpack.c.bf16 %v896_v23, %v895_v38  ;;  %v3075_v57 = vld [vmem:[%s4863_s1 + $0x80] sm:$0xff]  ;;  %vm839_vm5 = vcmask 56320   ;;  %vm4879_vm6 = vcmask 64512  }
  0xca   : > { %678 = vrot.lane.b32.xlu1 %v319_v17, %s4872_s29  ;;  %v417_v17 = vrot.slane %v416_v59, 2  ;;  %v468_v12 = vmax.f32 %v466_v44, %v467_v61  ;;  %v659_v62 = vmax.f32 %v657_v55, %v658_v3  ;;  %v3071_v44 = vld [vmem:[%s4863_s1 + $0x70] sm:$0xff]  ;;  %v488_v61 = vsel %vm293_vm7, %v3995_v1, -inf }
  0xcb   : > { %v772_v56 = vpop.permute.xlu0 %771  ;;  %3514 = vmatprep.subr.bf16.mxu1 %v3513_v27 }
  0xcc   : > { %v418_v35 = vmax.f32 %v416_v59, %v417_v17  ;;  %v395_v59 = vmax.f32 %v393_v20, %v394_v41  ;;  %v469_v18 = vrot.slane %v468_v12, 1  ;;  %v814_v19 = vsel %vm4883_vm12, %v813_v14, %v772_v56  ;;  %3516 = vmatpush3.bf16.msra.mxu1 %v3513_v27  ;;  %v3076_v56 = vld [vmem:[%s4863_s1 + $0x88] sm:$0xff] }
  0xcd   : > { %v489_v14 = vrot.slane %v488_v61, 4 }
  0xce   : > { %682 = vrot.lane.b32.xlu1 %v345_v32, %s4870_s9  ;;  %v800_v32 = vpop.permute.xlu1 %799  ;;  %v419_v50 = vrot.slane %v418_v35, 1  ;;  %v470_v29 = vmax.f32 %v468_v12, %v469_v18 }
  0xcf   : > { %v776_v15 = vpop.permute.xlu0 %775  ;;  %v490_v18 = vmax.f32 %v488_v61, %v489_v14  ;;  %v3077_v14 = vld [vmem:[%s4863_s1 + $0x90] sm:$0xff] }
  0xd0   : > { %v420_v26 = vmax.f32 %v418_v35, %v419_v50  ;;  %v815_v25 = vsel %vm4884_vm13, %v814_v19, %v776_v15  ;;  %v3058_v50 = vld [vmem:[%s4863_s1 + $0x28] sm:$0xff] }
  0xd1   : > { %v4264_v55 = vpack.c.bf16 %v3058_v50, %v3057_v49 }
  0xd2   : > { %710 = vrot.lane.b32.xlu1 %v539_v48, %s4870_s9  ;;  %v819_v48 = vsel %vm737_vm10, %v818_v30, %v792_v31  ;;  %v804_v31 = vpop.permute.xlu1 %803 }
  0xd3   : > { %v820_v6 = vsel %vm4881_vm11, %v819_v48, %v796_v4 }
  0xd6   : > { %714 = vrot.lane.b32.xlu1 %v563_v7, %s4887_s8  ;;  %v821_v7 = vsel %vm4883_vm12, %v820_v6, %v800_v32  ;;  %v808_v16 = vpop.permute.xlu1 %807  ;;  %v3069_v32 = vld [vmem:[%s4863_s1 + $0x60] sm:$0xff] }
  0xd7   : > { %706 = vrot.lane.b32.xlu0 %v514_v10, %s4872_s29  ;;  %v444_v10 = vrot.slane %v443_v60, 1  ;;  %v822_v4 = vsel %vm4884_vm13, %v821_v7, %v804_v31  ;;  %v3537_v35 = vpack.c.bf16 %v3070_v34, %v3069_v32  ;;  %s873_s29 = sld [smem:[#allocation2]] }
  0xd8   : > { %v823_v20 = vsel %vm4886_vm14, %v822_v4, %v808_v16 }
  0xd9   : > { %v445_v17 = vmax.f32 %v443_v60, %v444_v10  ;;  %v825_v30 = vmul.f32 0.125, %v823_v20  ;;  %3538 = vmatprep.subr.bf16.mxu0 %v3537_v35  ;;  %v4279_v60 = vsel %vm293_vm7, %v3992_v0, -inf }
  0xda   : > { %718 = vrot.lane.b32.xlu1 %v587_v28, %s3870_s13  ;;  %v780_v28 = vpop.permute.xlu0 %779  ;;  %3540 = vmatpush3.bf16.msra.mxu0 %v3537_v35 }
  0xdb   : > { %686 = vrot.lane.b32.xlu0 %v370_v54, %s4887_s8  ;;  %v898_v54 = vld [vmem:[%s4863_s1 + $0x18] sm:$0xff]  ;;  %v816_v41 = vsel %vm4886_vm14, %v815_v25, %v780_v28  ;;  %v491_v28 = vrot.slane %v490_v18, 2  ;;  %s4910_s8 = smov 80  }
  0xdc   : > { %v3517_v42 = vpack.c.bf16 %v898_v54, %v897_v40  ;;  %v824_v48 = vmul.f32 0.125, %v816_v41 }
  0xdd   : > { %v492_v34 = vmax.f32 %v490_v18, %v491_v28  ;;  %v3063_v18 = vld [vmem:[%s4863_s1 + $0x40] sm:$0xff] }
  0xde   : > { %722 = vrot.lane.b32.xlu1 %v611_v8, %s3871_s14  ;;  %3518 = vmatprep.subr.bf16.mxu1 %v3517_v42  ;;  %v3541_v8 = vpack.c.bf16 %v3072_v46, %v3071_v44 }
  0xdf   : > { %690 = vrot.lane.b32.xlu0 %v395_v59, %s3870_s13  ;;  %3520 = vmatpush3.bf16.msra.mxu1 %v3517_v42  ;;  %v4274_v59 = vpack.c.bf16 %v3076_v56, %v3075_v57  ;;  %v493_v41 = vrot.slane %v492_v34, 1 }
  0xe0   : > { %3542 = vmatprep.subr.bf16.mxu0 %v3541_v8  ;;  %3522 = vmatprep.subr.bf16.mxu1 %v4264_v55 }
  0xe1   : > { %3544 = vmatpush3.bf16.msra.mxu0 %v3541_v8 }
  0xe2   : > { %726 = vrot.lane.b32.xlu1 %v635_v2, %s3872_s15  ;;  %3546 = vmatprep.subr.bf16.mxu0 %v4274_v59 }
  0xe3   : > { %694 = vrot.lane.b32.xlu0 %v420_v26, %s3871_s14 }
  0xe6   : > { %730 = vrot.lane.b32.xlu1 %v659_v62, %s3873_s16 }
  0xe7   : > { %698 = vrot.lane.b32.xlu0 %v445_v17, %s3872_s15  ;;  %v295_v17 = vrot.slane %v4279_v60, 4 }
  0xe9   : > { %v296_v27 = vmax.f32 %v4279_v60, %v295_v17 }
  0xea   : > { %878 = vrot.lane.b32.xlu1 %v825_v30, %s3873_s16 }
  0xeb   : > { %702 = vrot.lane.b32.xlu0 %v470_v29, %s3873_s16  ;;  %v297_v32 = vrot.slane %v296_v27, 2 }
  0xed   : > { %v298_v54 = vmax.f32 %v296_v27, %v297_v32  ;;  %v3081_v32 = vld [vmem:[%s4863_s1 + $0xa0] sm:$0xff] }
  0xef   : > { %876 = vrot.lane.b32.xlu0 %v824_v48, %s3873_s16  ;;  %v299_v46 = vrot.slane %v298_v54, 1  ;;  %v494_v48 = vmax.f32 %v492_v34, %v493_v41 }
  0xf1   : > { %v300_v50 = vmax.f32 %v298_v54, %v299_v46  ;;  %v3066_v54 = vld [vmem:[%s4863_s1 + $0x58] sm:$0xff] }
 0x10e   : > { %327 = vmax.xlane.f32.xlu1 %v4088_v9  ;;  %308 = vmax.xlane.f32.xlu0 %v4279_v60  ;;  %v311_v9 = vpop.xlane.xlu0 %310 }
 0x112   : > { %403 = vmax.xlane.f32.xlu1 %v4161_v11  ;;  %353 = vmax.xlane.f32.xlu0 %v4095_v13  ;;  %v505_v0 = vpop.xlane.xlu1 %504 }
 0x116   : > { %453 = vmax.xlane.f32.xlu1 %v4188_v47  ;;  %378 = vmax.xlane.f32.xlu0 %v4143_v58 }
 0x11a   : > { %502 = vmax.xlane.f32.xlu1 %v488_v61  ;;  %428 = vmax.xlane.f32.xlu0 %v4173_v22 }
 0x11e   : > { %547 = vmax.xlane.f32.xlu1 %v4103_v24  ;;  %478 = vmax.xlane.f32.xlu0 %v4197_v5 }
 0x122   : > { %595 = vmax.xlane.f32.xlu1 %v4129_v51  ;;  %522 = vmax.xlane.f32.xlu0 %v4118_v37  ;;  %v826_v37 = vmul.f32 0.0625, %v4134_v53 }
 0x126   : > { %643 = vmax.xlane.f32.xlu1 %v4169_v21  ;;  %571 = vmax.xlane.f32.xlu0 %v4114_v36 }
 0x12a   : > { %619 = vmax.xlane.f32.xlu0 %v4152_v39 }
 0x12e   : > { %v335_v1 = vpop.xlane.xlu1 %334  ;;  %667 = vmax.xlane.f32.xlu0 %v4184_v43 }
 0x12f   : > { %v857_v51 = vsel %vm827_vm15, %v311_v9, %v335_v1 }
 0x132   : > { %v360_v13 = vpop.xlane.xlu0 %359  ;;  %v410_v24 = vpop.xlane.xlu1 %409 }
 0x133   : > { %v858_v58 = vsel %vm4876_vm0, %v857_v51, %v360_v13  ;;  %vm847_vm0 = vcmask 89088  }
 0x136   : > { %v385_v11 = vpop.xlane.xlu0 %384  ;;  %v460_v39 = vpop.xlane.xlu1 %459 }
 0x137   : > { %v859_v36 = vsel %vm4874_vm1, %v858_v58, %v385_v11  ;;  %1543 = vrot.lane.b32.xlu1 %v826_v37, %s3873_s16  ;;  %vm4880_vm1 = vcmask 72704  }
 0x138   : > { %v860_v21 = vsel %vm4875_vm2, %v859_v36, %v410_v24  ;;  %vm845_vm2 = vcmask 80896  }
 0x13a   : > { %v435_v22 = vpop.xlane.xlu0 %434 }
 0x13b   : > { %v861_v43 = vsel %vm4878_vm3, %v860_v21, %v435_v22  ;;  %vm851_vm3 = vcmask 105472  }
 0x13c   : > { %v862_v53 = vsel %vm4877_vm4, %v861_v43, %v460_v39  ;;  %vm849_vm4 = vcmask 97280  }
 0x13e   : > { %v554_v47 = vpop.xlane.xlu1 %553  ;;  %v485_v5 = vpop.xlane.xlu0 %484 }
 0x13f   : > { %v863_v6 = vsel %vm839_vm5, %v862_v53, %v485_v5 }
 0x140   : > { %v864_v63 = vsel %vm4879_vm6, %v863_v6, %v505_v0  ;;  %vm853_vm6 = vcmask 113664  }
 0x142   : > { %v602_v31 = vpop.xlane.xlu1 %601  ;;  %v530_v2 = vpop.xlane.xlu0 %529 }
 0x143   : > { %v865_v3 = vsel %vm4880_vm1, %v864_v63, %v530_v2  ;;  %vm4885_vm1 = vcmask 121856   ;;  %v3060_v63 = vld [vmem:[%s4863_s1 + $0x38] sm:$0xff] }
 0x144   : > { %v866_v26 = vsel %vm845_vm2, %v865_v3, %v554_v47 }
 0x146   : > { %v650_v7 = vpop.xlane.xlu1 %649  ;;  %v578_v10 = vpop.xlane.xlu0 %577 }
 0x147   : > { %v867_v12 = vsel %vm847_vm0, %v866_v26, %v578_v10 }
 0x148   : > { %v868_v4 = vsel %vm849_vm4, %v867_v12, %v602_v31  ;;  %v3059_v31 = vld [vmem:[%s4863_s1 + $0x30] sm:$0xff] }
 0x149   : > { %v3525_v12 = vpack.c.bf16 %v3060_v63, %v3059_v31 }
 0x14a   : > { %v679_v15 = vpop.permute.xlu1 %678  ;;  %v626_v16 = vpop.xlane.xlu0 %625 }
 0x14b   : > { %v869_v62 = vsel %vm851_vm3, %v868_v4, %v626_v16  ;;  %v734_v61 = vsel %vm733_vm8, %v300_v50, %v679_v15  ;;  %v3078_v15 = vld [vmem:[%s4863_s1 + $0x98] sm:$0xff] }
 0x14c   : > { %v870_v20 = vsel %vm853_vm6, %v869_v62, %v650_v7  ;;  %v3549_v28 = vpack.c.bf16 %v3078_v15, %v3077_v14  ;;  %v2140_v15 = vld [vmem:[%s4865_s3 + $0x10] sm:$0xff] }
 0x14e   : > { %v683_v19 = vpop.permute.xlu1 %682  ;;  %v674_v38 = vpop.xlane.xlu0 %673 }
 0x14f   : > { %v871_v23 = vsel %vm4885_vm1, %v870_v20, %v674_v38  ;;  %v736_v0 = vsel %vm4882_vm9, %v734_v61, %v683_v19  ;;  %v3064_v19 = vld [vmem:[%s4863_s1 + $0x48] sm:$0xff]  ;;  %v3087_v61 = vld [vmem:[%s4863_s1 + $0xc0] sm:$0xff]  ;;  %vm4895_vm1 = vcmask 39936  }
 0x150   : > { %v872_v25 = vmul.f32 0.0625, %v871_v23 }
 0x152   : > { %v711_v29 = vpop.permute.xlu1 %710  ;;  %v707_v30 = vpop.permute.xlu0 %706  ;;  %2127 = vrot.lane.b32.xlu0 %v872_v25, %s3873_s16 }
 0x153   : > { %v747_v57 = vsel %vm733_vm8, %v494_v48, %v707_v30  ;;  %vm899_vm8 = vcmask 261120   ;;  %v3529_v30 = vpack.c.bf16 %v3064_v19, %v3063_v18 }
 0x154   : > { %v748_v9 = vsel %vm4882_vm9, %v747_v57, %v711_v29 }
 0x156   : > { %v715_v35 = vpop.permute.xlu1 %714  ;;  %v687_v40 = vpop.permute.xlu0 %686 }
 0x157   : > { %v749_v1 = vsel %vm737_vm10, %v748_v9, %v715_v35  ;;  %v738_v13 = vsel %vm737_vm10, %v736_v0, %v687_v40  ;;  %v3082_v35 = vld [vmem:[%s4863_s1 + $0xa8] sm:$0xff]  ;;  %v3065_v40 = vld [vmem:[%s4863_s1 + $0x50] sm:$0xff] }
 0x158   : > { %v3553_v46 = vpack.c.bf16 %v3082_v35, %v3081_v32  ;;  %v3533_v48 = vpack.c.bf16 %v3066_v54, %v3065_v40  ;;  %v3088_v9 = vld [vmem:[%s4863_s1 + $0xc8] sm:$0xff] }
 0x15a   : > { %v719_v42 = vpop.permute.xlu1 %718  ;;  %v691_v44 = vpop.permute.xlu0 %690 }
 0x15b   : > { %v750_v37 = vsel %vm4881_vm11, %v749_v1, %v719_v42  ;;  %v740_v58 = vsel %vm4881_vm11, %v738_v13, %v691_v44  ;;  %v1554_v1 = vld [vmem:[%s4864_s2] sm:$0xff]  ;;  %v1555_v13 = vld [vmem:[%s4864_s2 + $0x8] sm:$0xff] }
 0x15e   : > { %v723_v8 = vpop.permute.xlu1 %722  ;;  %v695_v49 = vpop.permute.xlu0 %694 }
 0x15f   : > { %v751_v11 = vsel %vm4883_vm12, %v750_v37, %v723_v8  ;;  %v742_v36 = vsel %vm4883_vm12, %v740_v58, %v695_v49  ;;  %v3083_v8 = vld [vmem:[%s4863_s1 + $0xb0] sm:$0xff]  ;;  %v3561_v37 = vpack.c.bf16 %v3088_v9, %v3087_v61 }
 0x160   : > { %v3089_v58 = vld [vmem:[%s4863_s1 + $0xd0] sm:$0xff] }
 0x161   : > { %v3099_v61 = vld [vmem:[%s4864_s2 + $0x30] sm:$0xff] }
 0x162   : > { %v727_v56 = vpop.permute.xlu1 %726  ;;  %v699_v60 = vpop.permute.xlu0 %698 }
 0x163   : > { %v752_v39 = vsel %vm4884_vm13, %v751_v11, %v727_v56  ;;  %v744_v21 = vsel %vm4884_vm13, %v742_v36, %v699_v60  ;;  %v3570_v11 = vpack.c.bf16 %v1555_v13, %v1554_v1  ;;  %v3102_v13 = vld [vmem:[%s4864_s2 + $0x40] sm:$0xff] }
 0x166   : > { %v731_v24 = vpop.permute.xlu1 %730  ;;  %v703_v51 = vpop.permute.xlu0 %702 }
 0x167   : > { %v753_v22 = vsel %vm4886_vm14, %v752_v39, %v731_v24  ;;  %v746_v43 = vsel %vm4886_vm14, %v744_v21, %v703_v51  ;;  %v3090_v39 = vld [vmem:[%s4863_s1 + $0xd8] sm:$0xff]  ;;  %v3874_v21 = vmov 0.0|0.0  }
 0x16a   : > { %v879_v47 = vpop.permute.xlu1 %878  ;;  %v877_v53 = vpop.permute.xlu0 %876 }
 0x16b   : > { %v883_v5 = vsel %vm293_vm7, %v753_v22, %v879_v47  ;;  %v882_v6 = vsel %vm293_vm7, %v746_v43, %v877_v53  ;;  %v1556_v22 = vld [vmem:[%s4864_s2 + $0x10] sm:$0xff]  ;;  %v1557_v43 = vld [vmem:[%s4864_s2 + $0x18] sm:$0xff] }
 0x16c   : > { %v887_v2 = vrot.slane %v883_v5, 5  ;;  %v886_v3 = vrot.slane %v882_v6, 5  ;;  %v3565_v6 = vpack.c.bf16 %v3090_v39, %v3089_v58  ;;  %v3573_v31 = vpack.c.bf16 %v1557_v43, %v1556_v22  ;;  %v3104_v22 = vld [vmem:[%s4864_s2 + $0x50] sm:$0xff]  ;;  %v3105_v43 = vld [vmem:[%s4864_s2 + $0x58] sm:$0xff] }
 0x16e   : > { %v4341_v7 = vsel %vm737_vm10, %v887_v2, 0.0  ;;  %v4344_v26 = vsel %vm737_vm10, %v886_v3, %v887_v2  ;;  %v4347_v10 = vsel %vm737_vm10, 0.0, %v886_v3  ;;  %v3876_v2 = vmov 0.0  }
 0x16f   : > { %3290 = vmatprep.mubr.msk.f32.mxu1 %vm899_vm8, %v4347_v10  ;;  %v988_v4 = vrot.slane %v4347_v10, 1  ;;  %v989_v16 = vrot.slane %v4344_v26, 1  ;;  %v1170_v62 = vrot.slane %v4347_v10, 3  ;;  %v1171_v17 = vrot.slane %v4344_v26, 3 }
 0x170   : > { %3291 = vmatmul.mubr.msk.f32.vlgmr.msra.gmra.mrb[0].mxu1 %vm899_vm8, %v4344_v26  ;;  %v1173_v20 = vrot.slane %v4341_v7, 3  ;;  %v1261_v38 = vrot.slane %v4347_v10, 4  ;;  %v1262_v23 = vrot.slane %v4344_v26, 4  ;;  %v991_v34 = vrot.slane %v4341_v7, 1 }
 0x171   : > { %3524 = vmatpush3.bf16.msra.mxu1 %v4264_v55  ;;  %v990_v27 = vsel %vm4886_vm14, %v988_v4, %v989_v16  ;;  %v1172_v25 = vsel %vm4883_vm12, %v1170_v62, %v1171_v17  ;;  %v1079_v41 = vrot.slane %v4347_v10, 2  ;;  %v1080_v42 = vrot.slane %v4344_v26, 2  ;;  %v2141_v4 = vld [vmem:[%s4865_s3 + $0x18] sm:$0xff] }
 0x172   : > { %3301 = vmatprep.mubr.msk.f32.mxu1 %vm899_vm8, %v990_v27  ;;  %3323 = vmatprep.mubr.msk.f32.mxu0 %vm899_vm8, %v1172_v25  ;;  %v1174_v29 = vsel %vm4883_vm12, %v1171_v17, %v1173_v20  ;;  %v1263_v55 = vsel %vm4881_vm11, %v1261_v38, %v1262_v23  ;;  %v1264_v44 = vrot.slane %v4341_v7, 4  ;;  %v992_v49 = vsel %vm4886_vm14, %v989_v16, %v991_v34 }
 0x173   : > { %3324 = vmatmul.mubr.msk.f32.vlgmr.msra.gmra.mrb[0].mxu0 %vm899_vm8, %v1174_v29  ;;  %3526 = vmatprep.subr.bf16.mxu1 %v3525_v12  ;;  %v1352_v50 = vrot.slane %v4347_v10, 5  ;;  %v1353_v57 = vrot.slane %v4344_v26, 5  ;;  %v1081_v56 = vsel %vm4884_vm13, %v1079_v41, %v1080_v42  ;;  %v1082_v51 = vrot.slane %v4341_v7, 2 }
 0x174   : > { %3548 = vmatpush3.bf16.msra.mxu0 %v4274_v59  ;;  %3334 = vmatprep.mubr.msk.f32.mxu0 %vm899_vm8, %v1263_v55  ;;  %v3084_v59 = vld [vmem:[%s4863_s1 + $0xb8] sm:$0xff]  ;;  %v1265_v0 = vsel %vm4881_vm11, %v1262_v23, %v1264_v44  ;;  %v1355_v36 = vrot.slane %v4341_v7, 5  ;;  %v1443_v53 = vrot.slane %v4347_v10, 6  ;;  %v1444_v5 = vrot.slane %v4344_v26, 6  ;;  %v2138_v26 = vld [vmem:[%s4865_s3] sm:$0xff]  ;;  %v2139_v10 = vld [vmem:[%s4865_s3 + $0x8] sm:$0xff] }
 0x175   : > { %3528 = vmatpush3.bf16.msra.mxu1 %v3525_v12  ;;  %3550 = vmatprep.subr.bf16.mxu0 %v3549_v28  ;;  %v3557_v60 = vpack.c.bf16 %v3084_v59, %v3083_v8  ;;  %v1354_v24 = vsel %vm737_vm10, %v1352_v50, %v1353_v57  ;;  %v1083_v47 = vsel %vm4884_vm13, %v1080_v42, %v1082_v51  ;;  %vm3875_vm11 = vmmov 0  }
 0x176   : > { %3530 = vmatprep.subr.bf16.mxu1 %v3529_v30  ;;  %v1356_v63 = vsel %vm737_vm10, %v1353_v57, %v1355_v36  ;;  %v1445_v3 = vsel %vm4882_vm9, %v1443_v53, %v1444_v5  ;;  %v1446_v12 = vrot.slane %v4341_v7, 6  ;;  %v3612_v14 = vpack.c.bf16 %v2139_v10, %v2138_v26 }
 0x177   : > { %v3615_v7 = vpack.c.bf16 %v2141_v4, %v2140_v15  ;;  %vm4893_vm12 = vcmask 23552   ;;  %vm4894_vm13 = vcmask 31744   ;;  %vm4896_vm14 = vcmask 48128   ;;  %v3108_v15 = vld [vmem:[%s4864_s2 + $0x68] sm:$0xff] }
 0x178   : > { %3302 = vmatmul.mubr.msk.f32.vlgmr.msra.gmra.mrb[0].mxu1 %vm899_vm8, %v992_v49  ;;  %3552 = vmatpush3.bf16.msra.mxu0 %v3549_v28  ;;  %v1447_v16 = vsel %vm4882_vm9, %v1444_v5, %v1446_v12  ;;  %vm4892_vm9 = vcmask 15360   ;;  %v3130_v5 = vld [vmem:[%s4865_s3 + $0x20] sm:$0xff]  ;;  %v3585_v26 = vpack.c.bf16 %v3105_v43, %v3104_v22 }
 0x179   : > { %3532 = vmatpush3.bf16.msra.mxu1 %v3529_v30  ;;  %3312 = vmatprep.mubr.msk.f32.mxu1 %vm899_vm8, %v1081_v56  ;;  %v3145_v43 = vld [vmem:[%s4865_s3 + $0x80] sm:$0xff] }
 0x17a   : > { %3554 = vmatprep.subr.bf16.mxu0 %v3553_v46  ;;  %3534 = vmatprep.subr.bf16.mxu1 %v3533_v48 }
 0x17b   : > { %3335 = vmatmul.mubr.msk.f32.vlgmr.msra.gmra.mrb[0].mxu0 %vm899_vm8, %v1265_v0  ;;  %v3100_v0 = vld [vmem:[%s4864_s2 + $0x38] sm:$0xff] }
 0x17c   : > { %3556 = vmatpush3.bf16.msra.mxu0 %v3553_v46  ;;  %3345 = vmatprep.mubr.msk.f32.mxu0 %vm899_vm8, %v1354_v24  ;;  %v3097_v46 = vld [vmem:[%s4864_s2 + $0x20] sm:$0xff]  ;;  %v3103_v24 = vld [vmem:[%s4864_s2 + $0x48] sm:$0xff] }
 0x17d   : > { %3536 = vmatpush3.bf16.msra.mxu1 %v3533_v48  ;;  %3558 = vmatprep.subr.bf16.mxu0 %v3557_v60  ;;  %v3098_v48 = vld [vmem:[%s4864_s2 + $0x28] sm:$0xff]  ;;  %v3582_v39 = vpack.c.bf16 %v3103_v24, %v3102_v13  ;;  %v3142_v24 = vld [vmem:[%s4865_s3 + $0x70] sm:$0xff] }
 0x17e   : > { %3569 = vmatprep.subr.bf16.mxu1 %v3874_v21  ;;  %v3576_v56 = vpack.c.bf16 %v3098_v48, %v3097_v46 }
 0x180   : > { %3313 = vmatmul.mubr.msk.f32.vlgmr.msra.gmra.mrb[0].mxu1 %vm899_vm8, %v1083_v47  ;;  %3560 = vmatpush3.bf16.msra.mxu0 %v3557_v60 }
 0x181   : > { %3562 = vmatprep.subr.bf16.mxu0 %v3561_v37  ;;  %3571 = vmatpush3.bf16.msra.mxu1 %v3570_v11 }
 0x182   : > { %3572 = vmatprep.subr.bf16.mxu1 %v3874_v21  ;;  %3367 = vmatprep.mubr.msk.f32.mxu1 %vm3875_vm11, %v3876_v2 }
 0x183   : > { %3346 = vmatmul.mubr.msk.f32.vlgmr.msra.gmra.mrb[0].mxu0 %vm899_vm8, %v1356_v63 }
 0x184   : > { %3564 = vmatpush3.bf16.msra.mxu0 %v3561_v37  ;;  %3356 = vmatprep.mubr.msk.f32.mxu0 %vm899_vm8, %v1445_v3 }
 0x185   : > { %3566 = vmatprep.subr.bf16.mxu0 %v3565_v6  ;;  %3574 = vmatpush3.bf16.msra.mxu1 %v3573_v31 }
 0x186   : > { %3575 = vmatprep.subr.bf16.mxu1 %v3874_v21 }
 0x188   : > { %3568 = vmatpush3.bf16.msra.mxu0 %v3565_v6  ;;  %v3131_v6 = vld [vmem:[%s4865_s3 + $0x28] sm:$0xff] }
 0x189   : > { %3611 = vmatprep.subr.bf16.mxu0 %v3874_v21  ;;  %v3618_v12 = vpack.c.bf16 %v3131_v6, %v3130_v5 }
 0x18b   : > { %3357 = vmatmul.mubr.msk.f32.vlgmr.msra.gmra.mrb[0].mxu0 %vm899_vm8, %v1447_v16 }
 0x18c   : > { %3613 = vmatpush3.bf16.msra.mxu0 %v3612_v14  ;;  %3444 = vmatprep.mubr.msk.f32.mxu0 %vm3875_vm11, %v3876_v2  ;;  %v3107_v14 = vld [vmem:[%s4864_s2 + $0x60] sm:$0xff] }
 0x18d   : > { %3614 = vmatprep.subr.bf16.mxu0 %v3874_v21 }
 0x190   : > { %3616 = vmatpush3.bf16.msra.mxu0 %v3615_v7  ;;  %v3132_v7 = vld [vmem:[%s4865_s3 + $0x30] sm:$0xff] }
 0x191   : > { %3617 = vmatprep.subr.bf16.mxu0 %v3874_v21 }
 0x19b   : > { %v328_v62 = vpop.xlane.xlu1 %327  ;;  %v309_v17 = vpop.xlane.xlu0 %308 }
 0x19c   : > { %v828_v23 = vsel %vm827_vm15, %v309_v17, %v328_v62  ;;  %v3133_v62 = vld [vmem:[%s4865_s3 + $0x38] sm:$0xff]  ;;  %vm4901_vm15 = vcmask 1045504  }
 0x19f   : > { %v404_v18 = vpop.xlane.xlu1 %403  ;;  %v354_v19 = vpop.xlane.xlu0 %353 }
 0x1a0   : > { %v830_v28 = vsel %vm4892_vm9, %v828_v23, %v354_v19  ;;  %vm4897_vm9 = vcmask 64512   ;;  %v3588_v19 = vpack.c.bf16 %v3108_v15, %v3107_v14  ;;  %v3110_v23 = vld [vmem:[%s4864_s2 + $0x78] sm:$0xff] }
 0x1a1   : > { %v3148_v14 = vld [vmem:[%s4865_s3 + $0x98] sm:$0xff] }
 0x1a3   : > { %v454_v20 = vpop.xlane.xlu1 %453  ;;  %v379_v38 = vpop.xlane.xlu0 %378 }
 0x1a4   : > { %v832_v32 = vsel %vm4893_vm12, %v830_v28, %v379_v38  ;;  %vm4898_vm12 = vcmask 72704   ;;  %v3109_v38 = vld [vmem:[%s4864_s2 + $0x70] sm:$0xff]  ;;  %v3136_v28 = vld [vmem:[%s4865_s3 + $0x48] sm:$0xff] }
 0x1a5   : > { %v834_v55 = vsel %vm4894_vm13, %v832_v32, %v404_v18  ;;  %vm4899_vm13 = vcmask 1046528   ;;  %v3591_v32 = vpack.c.bf16 %v3110_v23, %v3109_v38  ;;  %v3151_v38 = vld [vmem:[%s4865_s3 + $0xa8] sm:$0xff] }
 0x1a7   : > { %v503_v27 = vpop.xlane.xlu1 %502  ;;  %v429_v25 = vpop.xlane.xlu0 %428 }
 0x1a8   : > { %v836_v40 = vsel %vm4895_vm1, %v834_v55, %v429_v25  ;;  %v3135_v25 = vld [vmem:[%s4865_s3 + $0x40] sm:$0xff]  ;;  %vm4903_vm1 = vcmask 1044480  }
 0x1a9   : > { %v838_v54 = vsel %vm4896_vm14, %v836_v40, %v454_v20  ;;  %vm4900_vm14 = vcmask 121856   ;;  %v3621_v20 = vpack.c.bf16 %v3133_v62, %v3132_v7  ;;  %v3624_v55 = vpack.c.bf16 %v3136_v28, %v3135_v25  ;;  %v3124_v7 = vld [vmem:[%s4864_s2 + $0xd0] sm:$0xff]  ;;  %v3125_v62 = vld [vmem:[%s4864_s2 + $0xd8] sm:$0xff] }
 0x1aa   : > { %v3609_v25 = vpack.c.bf16 %v3125_v62, %v3124_v7 }
 0x1ab   : > { %v548_v29 = vpop.xlane.xlu1 %547  ;;  %v479_v30 = vpop.xlane.xlu0 %478 }
 0x1ac   : > { %v840_v42 = vsel %vm839_vm5, %v838_v54, %v479_v30 }
 0x1ad   : > { %v842_v8 = vsel %vm4897_vm9, %v840_v42, %v503_v27  ;;  %v3138_v42 = vld [vmem:[%s4865_s3 + $0x58] sm:$0xff] }
 0x1af   : > { %v596_v34 = vpop.xlane.xlu1 %595  ;;  %v523_v35 = vpop.xlane.xlu0 %522 }
 0x1b0   : > { %v844_v49 = vsel %vm4898_vm12, %v842_v8, %v523_v35  ;;  %v3113_v35 = vld [vmem:[%s4864_s2 + $0x88] sm:$0xff]  ;;  %v3114_v8 = vld [vmem:[%s4864_s2 + $0x90] sm:$0xff]  ;;  %vm2773_vm12 = vcmask 654336  }
 0x1b1   : > { %v846_v9 = vsel %vm845_vm2, %v844_v49, %v548_v29  ;;  %vm4904_vm2 = vmmov %vm4901_vm15 }
 0x1b3   : > { %v644_v41 = vpop.xlane.xlu1 %643  ;;  %v572_v44 = vpop.xlane.xlu0 %571 }
 0x1b4   : > { %v848_v33 = vsel %vm847_vm0, %v846_v9, %v572_v44  ;;  %vm4902_vm0 = vmmov %vm4899_vm13  ;;  %v3117_v9 = vld [vmem:[%s4864_s2 + $0xa0] sm:$0xff] }
 0x1b5   : > { %v850_v51 = vsel %vm849_vm4, %v848_v33, %v596_v34  ;;  %v3112_v34 = vld [vmem:[%s4864_s2 + $0x80] sm:$0xff]  ;;  %v3118_v33 = vld [vmem:[%s4864_s2 + $0xa8] sm:$0xff]  ;;  %vm4906_vm4 = vmmov %vm4903_vm1 }
 0x1b6   : > { %v3594_v46 = vpack.c.bf16 %v3113_v35, %v3112_v34 }
 0x1b7   : > { %v1544_v59 = vpop.permute.xlu1 %1543  ;;  %v620_v60 = vpop.xlane.xlu0 %619 }
 0x1b8   : > { %v1546_v50 = vsel %vm293_vm7, %v675_v52, %v1544_v59  ;;  %v3579_v52 = vpack.c.bf16 %v3100_v0, %v3099_v61  ;;  %v852_v11 = vsel %vm851_vm3, %v850_v51, %v620_v60  ;;  %v3115_v59 = vld [vmem:[%s4864_s2 + $0x98] sm:$0xff]  ;;  %vm4905_vm3 = vcmask 1043456  }
 0x1b9   : > { %v1548_v57 = vrot.slane %v1546_v50, 5  ;;  %v854_v47 = vsel %vm853_vm6, %v852_v11, %v644_v41  ;;  %v3137_v41 = vld [vmem:[%s4865_s3 + $0x50] sm:$0xff]  ;;  %v3140_v50 = vld [vmem:[%s4865_s3 + $0x60] sm:$0xff]  ;;  %v3597_v61 = vpack.c.bf16 %v3115_v59, %v3114_v8  ;;  %v3143_v51 = vld [vmem:[%s4865_s3 + $0x78] sm:$0xff]  ;;  %vm4908_vm6 = vcmask 1041408  }
 0x1ba   : > { %v3627_v48 = vpack.c.bf16 %v3138_v42, %v3137_v41  ;;  %v3633_v11 = vpack.c.bf16 %v3143_v51, %v3142_v24  ;;  %vm4907_vm5 = vmmov %vm4905_vm3 }
 0x1bb   : > { %v4500_v1 = vsel %vm737_vm10, 0.0, %v1548_v57  ;;  %v4504_v45 = vsel %vm737_vm10, %v1548_v57, 0.0  ;;  %v668_v36 = vpop.xlane.xlu0 %667  ;;  %v3141_v57 = vld [vmem:[%s4865_s3 + $0x68] sm:$0xff]  ;;  %vm4909_vm9 = vmmov %vm4908_vm6 }
 0x1bc   : > { %3368 = vmatmul.mubr.msk.f32.vlgmr.msra.gmra.mrb[2].mxu1 %vm899_vm8, %v4500_v1  ;;  %v1638_v37 = vrot.slane %v4500_v1, 1  ;;  %v1639_v58 = vrot.slane %v4504_v45, 1  ;;  %v856_v31 = vsel %vm4900_vm14, %v854_v47, %v668_v36  ;;  %v1719_v4 = vrot.slane %v4500_v1, 2  ;;  %v3119_v36 = vld [vmem:[%s4864_s2 + $0xb0] sm:$0xff]  ;;  %v3146_v47 = vld [vmem:[%s4865_s3 + $0x88] sm:$0xff] }
 0x1bd   : > { %3577 = vmatpush3.bf16.msra.mxu1 %v3576_v56  ;;  %3378 = vmatprep.mubr.msk.f32.mxu1 %vm3875_vm11, %v3876_v2  ;;  %v1720_v16 = vrot.slane %v4504_v45, 2  ;;  %v1800_v40 = vrot.slane %v4500_v1, 3  ;;  %v1801_v54 = vrot.slane %v4504_v45, 3  ;;  %v3630_v0 = vpack.c.bf16 %v3141_v57, %v3140_v50 }
 0x1be   : > { %3578 = vmatprep.subr.bf16.mxu1 %v3874_v21  ;;  %v1640_v53 = vsel %vm4899_vm13, %v1638_v37, %v1639_v58  ;;  %v1882_v13 = vrot.slane %v4504_v45, 4  ;;  %v3600_v58 = vpack.c.bf16 %v3118_v33, %v3117_v9  ;;  %vm2775_vm13 = vcmask 785408  }
 0x1bf   : > { %v1721_v27 = vsel %vm4901_vm15, %v1719_v4, %v1720_v16  ;;  %v1802_v49 = vsel %vm4903_vm1, %v1800_v40, %v1801_v54  ;;  %v3156_v40 = vld [vmem:[%s4865_s3 + $0xc8] sm:$0xff]  ;;  %vm2777_vm14 = vcmask 916480  }
 0x1c1   : > { %3580 = vmatpush3.bf16.msra.mxu1 %v3579_v52  ;;  %v1881_v52 = vrot.slane %v4500_v1, 4 }
 0x1c2   : > { %3581 = vmatprep.subr.bf16.mxu1 %v3874_v21 }
 0x1c3   : > { %v1883_v22 = vsel %vm4905_vm3, %v1881_v52, %v1882_v13 }
 0x1c4   : > { %v2128_v63 = vpop.permute.xlu0 %2127  ;;  %3379 = vmatmul.mubr.msk.f32.vlgmr.msra.gmra.mrb[2].mxu1 %vm899_vm8, %v1640_v53 }
 0x1c5   : > { %v2130_v3 = vsel %vm293_vm7, %v856_v31, %v2128_v63  ;;  %3583 = vmatpush3.bf16.msra.mxu1 %v3582_v39  ;;  %3389 = vmatprep.mubr.msk.f32.mxu1 %vm3875_vm11, %v3876_v2  ;;  %v3120_v39 = vld [vmem:[%s4864_s2 + $0xb8] sm:$0xff]  ;;  %v3636_v31 = vpack.c.bf16 %v3146_v47, %v3145_v43  ;;  %v3122_v63 = vld [vmem:[%s4864_s2 + $0xc0] sm:$0xff] }
 0x1c6   : > { %v2132_v10 = vrot.slane %v2130_v3, 5  ;;  %3584 = vmatprep.subr.bf16.mxu1 %v3874_v21  ;;  %v3603_v6 = vpack.c.bf16 %v3120_v39, %v3119_v36  ;;  %v3123_v3 = vld [vmem:[%s4864_s2 + $0xc8] sm:$0xff] }
 0x1c7   : > { %v3606_v4 = vpack.c.bf16 %v3123_v3, %v3122_v63 }
 0x1c8   : > { %v4557_v17 = vsel %vm737_vm10, 0.0, %v2132_v10  ;;  %v4560_v18 = vsel %vm737_vm10, %v2132_v10, 0.0  ;;  %v1963_v10 = vrot.slane %v4504_v45, 5 }
 0x1c9   : > { %3586 = vmatpush3.bf16.msra.mxu1 %v3585_v26  ;;  %3445 = vmatmul.mubr.msk.f32.vlgmr.msra.gmra.mrb[2].mxu0 %vm899_vm8, %v4557_v17  ;;  %v2222_v29 = vrot.slane %v4557_v17, 1  ;;  %v2223_v30 = vrot.slane %v4560_v18, 1  ;;  %v2303_v56 = vrot.slane %v4557_v17, 2  ;;  %v2304_v60 = vrot.slane %v4560_v18, 2 }
 0x1ca   : > { %3619 = vmatpush3.bf16.msra.mxu0 %v3618_v12  ;;  %3587 = vmatprep.subr.bf16.mxu1 %v3874_v21  ;;  %v2384_v53 = vrot.slane %v4557_v17, 3  ;;  %v2385_v5 = vrot.slane %v4560_v18, 3  ;;  %v1962_v26 = vrot.slane %v4500_v1, 5  ;;  %v3147_v12 = vld [vmem:[%s4865_s3 + $0x90] sm:$0xff]  ;;  %v2465_v23 = vrot.slane %v4557_v17, 4 }
 0x1cb   : > { %3620 = vmatprep.subr.bf16.mxu0 %v3874_v21  ;;  %3455 = vmatprep.mubr.msk.f32.mxu0 %vm3875_vm11, %v3876_v2  ;;  %v2224_v44 = vsel %vm4902_vm0, %v2222_v29, %v2223_v30  ;;  %v2305_v37 = vsel %vm4904_vm2, %v2303_v56, %v2304_v60  ;;  %v3639_v16 = vpack.c.bf16 %v3148_v14, %v3147_v12  ;;  %v2043_v29 = vrot.slane %v4500_v1, 6 }
 0x1cc   : > { %3390 = vmatmul.mubr.msk.f32.vlgmr.msra.gmra.mrb[2].mxu1 %vm899_vm8, %v1721_v27  ;;  %v2386_v15 = vsel %vm4906_vm4, %v2384_v53, %v2385_v5  ;;  %v2466_v27 = vrot.slane %v4560_v18, 4  ;;  %v2044_v30 = vrot.slane %v4504_v45, 6  ;;  %v3155_v45 = vld [vmem:[%s4865_s3 + $0xc0] sm:$0xff]  ;;  %v2546_v54 = vrot.slane %v4557_v17, 5 }
 0x1cd   : > { %3589 = vmatpush3.bf16.msra.mxu1 %v3588_v19  ;;  %3400 = vmatprep.mubr.msk.f32.mxu1 %vm3875_vm11, %v3876_v2  ;;  %v1964_v19 = vsel %vm737_vm10, %v1962_v26, %v1963_v10  ;;  %v2547_v41 = vrot.slane %v4560_v18, 5  ;;  %v3648_v42 = vpack.c.bf16 %v3156_v40, %v3155_v45  ;;  %v2627_v59 = vrot.slane %v4557_v17, 6  ;;  %v2864_v40 = vld [vmem:[%s4867_s5] sm:$0xff] }
 0x1ce   : > { %3622 = vmatpush3.bf16.msra.mxu0 %v3621_v20  ;;  %3590 = vmatprep.subr.bf16.mxu1 %v3874_v21  ;;  %v3150_v20 = vld [vmem:[%s4865_s3 + $0xa0] sm:$0xff]  ;;  %v2467_v34 = vsel %vm4907_vm5, %v2465_v23, %v2466_v27  ;;  %v2045_v1 = vsel %vm4908_vm6, %v2043_v29, %v2044_v30  ;;  %v893_v60 = vstv %s873_s29  ;;  %s283_s29 = sand.u32 1, %s3856_s25  }
 0x1cf   : > { %3623 = vmatprep.subr.bf16.mxu0 %v3874_v21  ;;  %v3642_v28 = vpack.c.bf16 %v3151_v38, %v3150_v20  ;;  %s3052_s9 = sshll.u32 %s283_s29, 4  ;;  %s2961_s28 = scalar_lea.sflag [#allocation3], %s283_s29 }
 0x1d0   : > { %s285_s20 = scalar_lea.vmem [#allocation5], %s3052_s9 }
 0x1d1   : > { %3592 = vmatpush3.bf16.msra.mxu1 %v3591_v32  ;;  %3456 = vmatmul.mubr.msk.f32.vlgmr.msra.gmra.mrb[2].mxu0 %vm899_vm8, %v2224_v44  ;;  %v3152_v32 = vld [vmem:[%s4865_s3 + $0xb0] sm:$0xff] }
 0x1d2   : > { %3625 = vmatpush3.bf16.msra.mxu0 %v3624_v55  ;;  %3593 = vmatprep.subr.bf16.mxu1 %v3874_v21  ;;  %v3153_v55 = vld [vmem:[%s4865_s3 + $0xb8] sm:$0xff]  ;;  %v3157_v44 = vld [vmem:[%s4865_s3 + $0xd0] sm:$0xff] }
 0x1d3   : > { %3626 = vmatprep.subr.bf16.mxu0 %v3874_v21  ;;  %3466 = vmatprep.mubr.msk.f32.mxu0 %vm3875_vm11, %v3876_v2  ;;  %v3645_v35 = vpack.c.bf16 %v3153_v55, %v3152_v32 }
 0x1d4   : > { %3401 = vmatmul.mubr.msk.f32.vlgmr.msra.gmra.mrb[2].mxu1 %vm899_vm8, %v1802_v49  ;;  %v2628_v49 = vrot.slane %v4560_v18, 6  ;;  %v2786_v18 = vld [vmem:[%s4866_s4] sm:$0xff] }
 0x1d5   : > { %3595 = vmatpush3.bf16.msra.mxu1 %v3594_v46  ;;  %3411 = vmatprep.mubr.msk.f32.mxu1 %vm3875_vm11, %v3876_v2  ;;  %v3158_v46 = vld [vmem:[%s4865_s3 + $0xd8] sm:$0xff] }
 0x1d6   : > { %3628 = vmatpush3.bf16.msra.mxu0 %v3627_v48  ;;  %3596 = vmatprep.subr.bf16.mxu1 %v3874_v21  ;;  %v2548_v48 = vsel %vm737_vm10, %v2546_v54, %v2547_v41  ;;  %v3651_v8 = vpack.c.bf16 %v3158_v46, %v3157_v44  ;;  %v2629_v50 = vsel %vm4909_vm9, %v2627_v59, %v2628_v49  ;;  %v2866_v54 = vld [vmem:[%s4867_s5 + $0x10] sm:$0xff]  ;;  %vm2769_vm10 = vcmask 392192  }
 0x1d7   : > { %3629 = vmatprep.subr.bf16.mxu0 %v3874_v21  ;;  %v3659_v41 = vpack.c.bf16 %v2866_v54, %v2864_v40 }
 0x1d9   : > { %3598 = vmatpush3.bf16.msra.mxu1 %v3597_v61  ;;  %3467 = vmatmul.mubr.msk.f32.vlgmr.msra.gmra.mrb[2].mxu0 %vm899_vm8, %v2305_v37  ;;  %v2787_v61 = vld [vmem:[%s4866_s4 + $0x8] sm:$0xff] }
 0x1da   : > { %3631 = vmatpush3.bf16.msra.mxu0 %v3630_v0  ;;  %3599 = vmatprep.subr.bf16.mxu1 %v3874_v21  ;;  %v2788_v0 = vld [vmem:[%s4866_s4 + $0x10] sm:$0xff]  ;;  %v2865_v37 = vld [vmem:[%s4867_s5 + $0x8] sm:$0xff] }
 0x1db   : > { %3632 = vmatprep.subr.bf16.mxu0 %v3874_v21  ;;  %3477 = vmatprep.mubr.msk.f32.mxu0 %vm3875_vm11, %v3876_v2  ;;  %v3655_v33 = vpack.c.bf16 %v2788_v0, %v2786_v18 }
 0x1dc   : > { %3412 = vmatmul.mubr.msk.f32.vlgmr.msra.gmra.mrb[2].mxu1 %vm899_vm8, %v1883_v22 }
 0x1dd   : > { %3601 = vmatpush3.bf16.msra.mxu1 %v3600_v58  ;;  %3422 = vmatprep.mubr.msk.f32.mxu1 %vm3875_vm11, %v3876_v2  ;;  %v2867_v58 = vld [vmem:[%s4867_s5 + $0x18] sm:$0xff] }
 0x1de   : > { %3634 = vmatpush3.bf16.msra.mxu0 %v3633_v11  ;;  %3602 = vmatprep.subr.bf16.mxu1 %v3874_v21  ;;  %v3657_v36 = vpack.c.bf16 %v2867_v58, %v2865_v37 }
 0x1df   : > { %3635 = vmatprep.subr.bf16.mxu0 %v3874_v21 }
 0x1e1   : > { %3604 = vmatpush3.bf16.msra.mxu1 %v3603_v6  ;;  %3478 = vmatmul.mubr.msk.f32.vlgmr.msra.gmra.mrb[2].mxu0 %vm899_vm8, %v2386_v15 }
 0x1e2   : > { %3637 = vmatpush3.bf16.msra.mxu0 %v3636_v31  ;;  %3605 = vmatprep.subr.bf16.mxu1 %v3874_v21 }
 0x1e3   : > { %3638 = vmatprep.subr.bf16.mxu0 %v3874_v21  ;;  %3488 = vmatprep.mubr.msk.f32.mxu0 %vm3875_vm11, %v3876_v2 }
 0x1e4   : > { %3423 = vmatmul.mubr.msk.f32.vlgmr.msra.gmra.mrb[2].mxu1 %vm899_vm8, %v1964_v19 }
 0x1e5   : > { %3607 = vmatpush3.bf16.msra.mxu1 %v3606_v4  ;;  %3433 = vmatprep.mubr.msk.f32.mxu1 %vm3875_vm11, %v3876_v2 }
 0x1e6   : > { %3640 = vmatpush3.bf16.msra.mxu0 %v3639_v16  ;;  %3608 = vmatprep.subr.bf16.mxu1 %v3874_v21 }
 0x1e7   : > { %3641 = vmatprep.subr.bf16.mxu0 %v3874_v21 }
 0x1e9   : > { %3610 = vmatpush3.bf16.msra.mxu1 %v3609_v25  ;;  %3489 = vmatmul.mubr.msk.f32.vlgmr.msra.gmra.mrb[2].mxu0 %vm899_vm8, %v2467_v34 }
 0x1ea   : > { %3643 = vmatpush3.bf16.msra.mxu0 %v3642_v28  ;;  %3499 = vmatprep.mubr.msk.f32.mxu0 %vm3875_vm11, %v3876_v2 }
 0x1eb   : > { %3644 = vmatprep.subr.bf16.mxu0 %v3874_v21 }
 0x1ec   : > { %3434 = vmatmul.mubr.msk.f32.vlgmr.msra.gmra.mrb[2].mxu1 %vm899_vm8, %v2045_v1 }
 0x1ed   : > { %2857 = vmatprep.mubr.f32.mxu1 %v3876_v2 }
 0x1ee   : > { %3646 = vmatpush3.bf16.msra.mxu0 %v3645_v35 }
 0x1ef   : > { %3647 = vmatprep.subr.bf16.mxu0 %v3874_v21 }
 0x1f1   : > { %3500 = vmatmul.mubr.msk.f32.vlgmr.msra.gmra.mrb[2].mxu0 %vm899_vm8, %v2548_v48 }
 0x1f2   : > { %3649 = vmatpush3.bf16.msra.mxu0 %v3648_v42  ;;  %3510 = vmatprep.mubr.msk.f32.mxu0 %vm3875_vm11, %v3876_v2  ;;  %vm2771_vm11 = vcmask 523264  }
 0x1f3   : > { %3650 = vmatprep.subr.bf16.mxu0 %v3874_v21  ;;  %v2789_v21 = vld [vmem:[%s4866_s4 + $0x18] sm:$0xff] }
 0x1f4   : > { %v3653_v17 = vpack.c.bf16 %v2789_v21, %v2787_v61 }
 0x1f6   : > { %3652 = vmatpush3.bf16.msra.mxu0 %v3651_v8  ;;  %3654 = vmatprep.subr.bf16.mxu1 %v3653_v17 }
 0x1f7   : > { %3656 = vmatpush1.bf16.msra.mxu1 %v3655_v33  ;;  %v2942_v33 = vlaneseq }
 0x1f8   : > { %3658 = vmatprep.subr.bf16.mxu1 %v3657_v36 }
 0x1f9   : > { %3511 = vmatmul.mubr.msk.f32.vlgmr.msra.gmra.mrb[2].mxu0 %vm899_vm8, %v2629_v50  ;;  %v2943_v58 = vshrl.u32 %v2942_v33, 7 }
 0x253   : > { %v3314_v57 = vpop.f32.mrb[0].mxu1 }
 0x254   : > { %v1154_v56 = vpop.f32.mrb[1].mxu1  ;;  %v3661_v9 = vadd.f32 %v3314_v57, %v893_v60 }
 0x255   : > { %v3663_v52 = vadd.f32 %v1154_v56, %v893_v60 }
 0x25e   : > { %v3358_v13 = vpop.f32.mrb[0].mxu0 }
 0x25f   : > { %v3662_v24 = vadd.f32 %v3661_v9, %v3358_v13  ;;  %v1518_v51 = vpop.f32.mrb[1].mxu0 }
 0x260   : > { %v3664_v11 = vadd.f32 %v3663_v52, %v1518_v51 }
 0x261   : > { %v3094_v39 = vmul.f32 -1.442695, %v3662_v24 }
 0x262   : > { %v3093_v22 = vmul.f32 -1.442695, %v3664_v11 }
 0x263   : > { %3765 = vpow2.f32 %v3094_v39 }
 0x264   : > { %3767 = vpow2.f32 %v3093_v22 }
 0x26d   : > { %v3766_v43 = vpop.eup %3765 }
 0x26e   : > { %v1536_v47 = vadd.f32 1.0, %v3766_v43  ;;  %v3768_v53 = vpop.eup %3767 }
 0x26f   : > { %v1535_v5 = vadd.f32 1.0, %v3768_v53  ;;  %v2944_v53 = vsub.s32 0, %v2943_v58 }
 0x270   : > { %3769 = vrcp.f32 %v1536_v47 }
 0x271   : > { %3771 = vrcp.f32 %v1535_v5 }
 0x27a   : > { %v4766_v6 = vpop.eup %3769 }
 0x27b   : > { %v2743_v31 = vrot.slane %v4766_v6, 2  ;;  %v2739_v63 = vrot.slane %v4766_v6, 1  ;;  %v2751_v3 = vrot.slane %v4766_v6, 4  ;;  %v2747_v26 = vrot.slane %v4766_v6, 3  ;;  %v4774_v10 = vpop.eup %3771 }
 0x27c   : > { %v2755_v12 = vrot.slane %v4766_v6, 5  ;;  %v2718_v14 = vrot.slane %v4774_v10, 3  ;;  %v2726_v15 = vrot.slane %v4774_v10, 5  ;;  %v2710_v4 = vrot.slane %v4774_v10, 1 }
 0x27d   : > { %2744 = vrot.lane.b32.xlu0 %v2743_v31, %s3872_s15  ;;  %2740 = vrot.lane.b32.xlu1 %v2739_v63, %s3873_s16  ;;  %v2734_v16 = vrot.slane %v4774_v10, 7  ;;  %v2714_v7 = vrot.slane %v4774_v10, 2  ;;  %v2759_v62 = vrot.slane %v4766_v6, 6  ;;  %v2722_v19 = vrot.slane %v4774_v10, 4 }
 0x27e   : > { %v2730_v20 = vrot.slane %v4774_v10, 6  ;;  %v2763_v38 = vrot.slane %v4766_v6, 7 }
 0x281   : > { %2752 = vrot.lane.b32.xlu0 %v2751_v3, %s3870_s13  ;;  %2748 = vrot.lane.b32.xlu1 %v2747_v26, %s3871_s14 }
 0x285   : > { %2756 = vrot.lane.b32.xlu1 %v2755_v12, %s4910_s8  ;;  %2719 = vrot.lane.b32.xlu0 %v2718_v14, %s3871_s14  ;;  %s4912_s14 = smov 96  }
 0x289   : > { %2727 = vrot.lane.b32.xlu0 %v2726_v15, %s4910_s8  ;;  %2711 = vrot.lane.b32.xlu1 %v2710_v4, %s3873_s16  ;;  %s3095_s16 = sld [smem:[#allocation2 + $0x1]]  ;;  %s2975_s8 = sshll.u32 %s285_s20, 4  ;;  %s4822_s8 = int_to_ptr.vmem [resolvable:$true] %s2975_s8 }
 0x28d   : > { %2735 = vrot.lane.b32.xlu0 %v2734_v16, %s4911_s21  ;;  %2715 = vrot.lane.b32.xlu1 %v2714_v7, %s3872_s15  ;;  %s3128_s15 = sld [smem:[#allocation2 + $0x2]]  ;;  %v3781_v16 = vld [vmem:[%s3989_s23] sm:$0xff] }
 0x28f   : > { %v1552_v23 = vstv %s3095_s16  ;;  %s4820_s16 = scalar_lea.hbm %s4869_s7, %s3169_s19 }
 0x291   : > { %2760 = vrot.lane.b32.xlu0 %v2759_v62, %s4912_s14  ;;  %2723 = vrot.lane.b32.xlu1 %v2722_v19, %s3870_s13  ;;  %v3782_v62 = vld [vmem:[%s3989_s23 + $0x8] sm:$0xff]  ;;  %s3877_s23 = smov [#allocation5]  }
 0x292   : > { %s3802_s13 = sshll.u32 %s3877_s23, 4  ;;  %s3803_s13 = int_to_ptr.vmem [resolvable:$false] %s3802_s13 }
 0x293   : > { %v2136_v30 = vstv %s3128_s15  ;;  %s3798_s15 = scalar_lea.vmem %s4822_s8, 256  ;;  %s3804_s22 = scalar_lea.vmem %s3803_s13, 512 }
 0x294   : > { %p3799_p9 = scmp.ne.s32.totalorder %s4822_s8, %s3798_s15  ;;  %p3805_p13 = scmp.lt.s32.totalorder %s4822_s8, %s3803_s13 }
 0x295   : > { %2731 = vrot.lane.b32.xlu1 %v2730_v20, %s4912_s14  ;;  %p3806_p0 = scmp.lt.s32.totalorder %s3804_s22, %s3798_s15 }
 0x296   : > { %p3800_p10 = pnand %p3799_p9, %p3956_p5 }
 0x297   : > { %p3807_p1 = por %p3806_p0, %p3805_p13 }
 0x298   : > { %p3801_p12 = pneg %p3800_p10 }
 0x299   : > { %2764 = vrot.lane.b32.xlu1 %v2763_v38, %s4911_s21 }
 0x29a   : > { %p3808_p2 = pnand %p3807_p1, %p3801_p12 }
 0x2bf   : > { %v2114_v27 = vpop.f32.mrb[2].mxu1 }
 0x2c0   : > { %v3665_v25 = vadd.f32 %v2114_v27, %v1552_v23  ;;  %v3435_v28 = vpop.f32.mrb[3].mxu1 }
 0x2c2   : > { %v3127_v29 = vmul.f32 -1.442695, %v3665_v25 }
 0x2c4   : > { %3773 = vpow2.f32 %v3127_v29 }
 0x2cc   : > { %v2698_v32 = vpop.f32.mrb[2].mxu0 }
 0x2cd   : > { %v3666_v55 = vadd.f32 %v2698_v32, %v2136_v30  ;;  %v3512_v34 = vpop.f32.mrb[3].mxu0 }
 0x2ce   : > { %v3774_v35 = vpop.eup %3773 }
 0x2cf   : > { %v2122_v1 = vadd.f32 1.0, %v3774_v35  ;;  %v3160_v45 = vmul.f32 -1.442695, %v3666_v55 }
 0x2d1   : > { %3775 = vrcp.f32 %v2122_v1 }
 0x2d2   : > { %3777 = vpow2.f32 %v3160_v45 }
 0x2db   : > { %v3776_v42 = vpop.eup %3775 }
 0x2dc   : > { %v3778_v44 = vpop.eup %3777  ;;  %3161 = vmatmul.mubr.msk.f32.vlgmr.msra.gmra.mrb[4].mxu1 %vm293_vm7, %v3776_v42 }
 0x2dd   : > { %v2706_v46 = vadd.f32 1.0, %v3778_v44  ;;  %3660 = vmatpush1.bf16.msra.mxu1 %v3659_v41  ;;  %2935 = vmatprep.mubr.f32.mxu1 %v3876_v2 }
 0x2df   : > { %3779 = vrcp.f32 %v2706_v46 }
 0x2e9   : > { %v3780_v48 = vpop.eup %3779 }
 0x2ea   : > { %3162 = vmatmul.mubr.msk.f32.vlgmr.msra.gmra.mrb[4].mxu1 %vm293_vm7, %v3780_v48 }
 0x2ef   : > { %v2741_v8 = vpop.permute.xlu1 %2740  ;;  %v2745_v49 = vpop.permute.xlu0 %2744 }
 0x2f0   : > { %v2779_v2 = vsel %vm293_vm7, %v4766_v6, %v2741_v8 }
 0x2f1   : > { %v2780_v51 = vsel %vm899_vm8, %v2779_v2, %v2745_v49 }
 0x2f3   : > { %v2749_v59 = vpop.permute.xlu1 %2748  ;;  %v2753_v57 = vpop.permute.xlu0 %2752 }
 0x2f4   : > { %v2781_v37 = vsel %vm2769_vm10, %v2780_v51, %v2749_v59 }
 0x2f5   : > { %v2782_v22 = vsel %vm2771_vm11, %v2781_v37, %v2753_v57 }
 0x2f7   : > { %v2757_v50 = vpop.permute.xlu1 %2756  ;;  %v2720_v60 = vpop.permute.xlu0 %2719 }
 0x2f8   : > { %v2783_v47 = vsel %vm2773_vm12, %v2782_v22, %v2757_v50 }
 0x2fb   : > { %v2712_v56 = vpop.permute.xlu1 %2711  ;;  %v2728_v21 = vpop.permute.xlu0 %2727 }
 0x2fc   : > { %v2767_v18 = vsel %vm293_vm7, %v4774_v10, %v2712_v56 }
 0x2ff   : > { %v2716_v61 = vpop.permute.xlu1 %2715  ;;  %v2736_v9 = vpop.permute.xlu0 %2735 }
 0x300   : > { %v2768_v0 = vsel %vm899_vm8, %v2767_v18, %v2716_v61 }
 0x301   : > { %v2770_v52 = vsel %vm2769_vm10, %v2768_v0, %v2720_v60 }
 0x303   : > { %v2724_v17 = vpop.permute.xlu1 %2723  ;;  %v2761_v36 = vpop.permute.xlu0 %2760 }
 0x304   : > { %v2772_v24 = vsel %vm2771_vm11, %v2770_v52, %v2724_v17  ;;  %v2784_v5 = vsel %vm2775_vm13, %v2783_v47, %v2761_v36 }
 0x305   : > { %v2774_v11 = vsel %vm2773_vm12, %v2772_v24, %v2728_v21 }
 0x307   : > { %v2732_v13 = vpop.permute.xlu1 %2731 }
 0x308   : > { %v2776_v39 = vsel %vm2775_vm13, %v2774_v11, %v2732_v13 }
 0x309   : > { %v2778_v6 = vsel %vm2777_vm14, %v2776_v39, %v2736_v9 }
 0x30a   : > { %v2945_v63 = vrot.slane %v2778_v6, %v2944_v53 }
 0x30b   : > { %v2765_v43 = vpop.permute.xlu1 %2764 }
 0x30c   : > { %v2785_v31 = vsel %vm2777_vm14, %v2784_v5, %v2765_v43 }
 0x30d   : > { %v2949_v26 = vrot.slane %v2785_v31, %v2944_v53 }
 0x3bd   : > { %v2937_v3 = vpop.f32.mrb[4].mxu1 }
 0x3be   : > { %v3667_v10 = vadd.f32 %v2945_v63, %v2937_v3  ;;  %v2939_v12 = vpop.f32.mrb[5].mxu1 }
 0x3bf   : > { %v3668_v14 = vadd.f32 %v2949_v26, %v2939_v12 }
 0x3c0   : > { %v2954_v15 = vmul.f32 0.33333334, %v3667_v10 }
 0x3c1   : > { %v2955_v4 = vmul.f32 0.33333334, %v3668_v14 }
 0x3c2   : > { %v2956_v7 = vmul.f32 %v3781_v16, %v2954_v15 }
 0x3c3   : > { %v2957_v19 = vmul.f32 %v3782_v62, %v2955_v4 }
 0x3c4   : > { %2958 = vst [vmem:[%s285_s20] sm:$0xff] %v2956_v7 }
 0x3c5   : > { %2959 = vst [vmem:[%s285_s20 + $0x8] sm:$0xff] %v2957_v19 }
 0x3c6   : > { %3811 = shalt.err (!%p3808_p2)
}
 0x3c7   : > { %s3812_s17 = scalar_lea.hbm %s4820_s16, 256  ;;  %s3816_s9 = scalar_lea.hbm %s4869_s7, 512 }
 0x3c8   : > { %p3813_p3 = scmp.ne.s32.totalorder %s4820_s16, %s3812_s17  ;;  %p3817_p8 = scmp.lt.u32.totalorder %s4820_s16, %s4869_s7 }
 0x3c9   : > { %p3818_p11 = scmp.lt.u32.totalorder %s3816_s9, %s3812_s17  ;;  %p3820_p10 = scmp.lt.u32.totalorder %s3812_s17, %s4820_s16 }
 0x3ca   : > { %p3814_p4 = pnand %p3813_p3, %p3956_p5 }
 0x3cb   : > { %p3819_p9 = por %p3818_p11, %p3817_p8 }
 0x3cc   : > { %p3815_p7 = pneg %p3814_p4 }
 0x3cd   : > { %p3821_p12 = por %p3820_p10, %p3819_p9 }
 0x3cf   : > { %p3822_p13 = pnand %p3821_p12, %p3815_p7 }
 0x3d1   : > { %3825 = shalt.err (!%p3822_p13)
}
 0x3d2   : > { %3709 = dma.vmem_to_hbm [thread:$0]  (%p3956_p5), %s4822_s8, 256, %s4820_s16, %s2961_s28  }
 0x3d3 PF: > { %p3721_p0 = scmp.ge.s32.totalorder %s3864_s27, 2  ;;  %s2987_s21 = sand.u32 1, %s3852_s24  }
 0x3d4   : > { %s2988_s14 = scalar_lea.sflag [#allocation3], %s2987_s21 }
 0x3d5   : > { %p3716_p1 = pnand %p3721_p0, %p3960_p6 }
 0x3d7   : > { %3847 = dma.done.wait (!%p3716_p1), %s2988_s14, 256  }
 0x3d8   : > { %3849 = vsyncadd (!%p3716_p1), %s2988_s14, 4294967040  ;;  %p18_p2 = scmp.ge.s32.totalorder %s3943_s30, 4   ;;  %s4913_s24 = smov %s3856_s25 }
 0x3d9   : > { %s4914_s25 = smov %s3860_s26  ;;  %s4915_s26 = smov %s3954_s10 }
 0x3da   : > { %s4916_s27 = smov %s3943_s30  ;;  %20 = sbr.rel (!%p18_p2) target bundleno = 4 (0x4), region = 106 }
 0x3e1   :  { %2993 = vsyncpa [#allocation3], 1 }
 0x3e2   :  { %2995 = vsyncpa [#allocation3 + $0x1], 1 }
 0x3e3   :  { %2996 = vsyncpa [#allocation4], 1 }
 0x3e4   :  { %2998 = vsyncpa [#allocation4 + $0x1], 1 }

</bundles_post_ra>
